<compile_context>
chip_gen: v7x
topology: tpu7x:2x2x1
jax: 0.10.0
libtpu: 0.0.40
codegen_flags: <defaults>
</compile_context>

<pallas_src>
import math
from functools import partial

import jax
import jax.numpy as jnp
from jax.experimental import pallas as pl
from jax.experimental.pallas import tpu as pltpu

# ----------------------------- configuration ---------------------------------
BATCH = 2
TIME_STEPS = 3          # scaled down from 5
IN_CHANS = 3
IMG = 28                # scaled down from 231 (stem stride 4 -> 7x7 feature map)
PATCH = 4
FEAT_DIM = 128          # stand-in for convnext_base feature dim (1024)
MAMBA_DIM = 64          # scaled down from 512
MAMBA_NUM = 2           # scaled down from 8 (outer MambaBlock count)
LAYERS_PER_BLOCK = 2    # scaled down from 8 (Mamba layers inside each MambaBlock)
NUM_CLASSES = 6
D_STATE = 16
D_CONV = 4
EXPAND = 2
D_INNER = EXPAND * MAMBA_DIM
DT_RANK = -(-MAMBA_DIM // 16)   # ceil(d_model / 16)
N_LAYERS = MAMBA_NUM * LAYERS_PER_BLOCK
LANE = 128              # classifier output padded to a lane-dense slab


def _silu(x):
    # SiLU in f32; reciprocal routed to the EUP slot.
    return x * pl.reciprocal(1.0 + jnp.exp(-x), approx=True)


# ------------------------------- kernels --------------------------------------
def _patchify_ln_kernel(p_ref, w_ref, b_ref, g_ref, beta_ref, o_ref):
    # Stand-in ConvNeXt stem: patchify conv (as matmul, bf16 MXU operands) + LayerNorm.
    y = jnp.dot(p_ref[...].astype(jnp.bfloat16), w_ref[...],
                preferred_element_type=jnp.float32) + b_ref[...]
    mu = jnp.mean(y, axis=-1, keepdims=True)
    var = jnp.mean((y - mu) ** 2, axis=-1, keepdims=True)
    o_ref[...] = (y - mu) * jax.lax.rsqrt(var + 1e-6) * g_ref[...] + beta_ref[...]


def _temporal_stack_kernel(feats_ref, cc1_ref, cc2_ref,
                           in_x_ref, in_z_ref, conv_w_ref, conv_b_ref,
                           xp_ref, dt_w_ref, dt_b_ref, a_ref, d_ref, out_w_ref,
                           cls_w_ref, cls_b_ref,
                           o_ref, seq_ref, *, batch, time_steps):
    """Whole temporal path in one kernel.  grid=(n_layers,), seq lives in VMEM scratch."""
    layer = pl.program_id(0)
    n_layers = pl.num_programs(0)
    B = batch
    T = time_steps
    Tn = T - 1
    BL = B * Tn                                 # batch folded into matmul rows
    F = feats_ref.shape[2]
    Dm = seq_ref.shape[1]
    dI = in_x_ref.shape[2]
    K = conv_w_ref.shape[1]
    dS = a_ref.shape[1]
    R = dt_w_ref.shape[1]

    # ---- prologue (layer 0 only): spatial avg-pool + temporal pairing + conv_compress.
    #      Exact commutation of AdaptiveAvgPool2d ahead of the 1x1 *bias-free* conv.
    @pl.when(layer == 0)
    def _():
        pooled = jnp.mean(feats_ref[...], axis=1)                       # (B*T, F)
        p3 = pooled.reshape(B, T, F)
        a = p3[:, :Tn, :].reshape(BL, F).astype(jnp.bfloat16)           # frame t
        b = p3[:, 1:, :].reshape(BL, F).astype(jnp.bfloat16)            # frame t+1
        seq_ref[...] = (jnp.dot(a, cc1_ref[...], preferred_element_type=jnp.float32)
                        + jnp.dot(b, cc2_ref[...], preferred_element_type=jnp.float32))

    # ---- one Mamba(d_state=16, d_conv=4, expand=2) layer, all batches in the row axis.
    x2d = seq_ref[...]                                                  # (BL, Dm) f32
    xb = x2d.astype(jnp.bfloat16)
    xr = jnp.dot(xb, in_x_ref[0], preferred_element_type=jnp.float32)   # (BL, dI)
    z = jnp.dot(xb, in_z_ref[0], preferred_element_type=jnp.float32)    # (BL, dI)

    # causal depthwise conv1d + SiLU; per-batch causal via (B, Tn, dI) view;
    # taps that only see padding (shift >= Tn) are statically dropped.
    conv_w = conv_w_ref[0]                                              # (K, dI)
    pad = min(K - 1, Tn - 1)
    xr3 = xr.reshape(B, Tn, dI)
    xpd = jnp.concatenate([jnp.zeros((B, pad, dI), jnp.float32), xr3], axis=1)
    acc = jnp.zeros((B, Tn, dI), jnp.float32) + conv_b_ref[0]
    for k in range(K):
        s = K - 1 - k                       # how far back in time this tap looks
        if s > pad:
            continue                        # entirely in the causal padding for all rows
        acc = acc + xpd[:, pad - s: pad - s + Tn, :] * conv_w[k:k + 1, :]
    xc = acc.reshape(BL, dI)
    xc = _silu(xc)

    # x_proj (dt/B/C merged into one matmul, sliced in-register) + dt_proj + softplus
    xcb = xc.astype(jnp.bfloat16)
    dbc = jnp.dot(xcb, xp_ref[0], preferred_element_type=jnp.float32)   # (BL, R+2*dS)
    dt_r = dbc[:, :R]
    Bm = dbc[:, R:R + dS]
    Cm = dbc[:, R + dS:]
    dt_raw = (jnp.dot(dt_r.astype(jnp.bfloat16), dt_w_ref[0],
                      preferred_element_type=jnp.float32) + dt_b_ref[0])
    # numerically stable softplus
    delta = jnp.maximum(dt_raw, 0.0) + jnp.log1p(jnp.exp(-jnp.abs(dt_raw)))  # (BL, dI)

    # selective scan: time-dependent terms hoisted off the serial recurrence
    At = a_ref[0]                                                       # (dS, dI)
    du = delta * xc                                                     # (BL, dI)
    dA_all = jnp.exp(delta[:, None, :] * At[None, :, :])                # (BL, dS, dI)
    Bu_all = Bm[:, :, None] * du[:, None, :]                            # (BL, dS, dI)
    C_all = Cm[:, :, None]                                              # (BL, dS, 1)

    ys = []
    for b in range(B):                       # recurrence is per-batch, fully unrolled
        h = jnp.zeros((dS, dI), jnp.float32)
        for t in range(Tn):
            r = b * Tn + t
            h = dA_all[r] * h + Bu_all[r]                               # (dS, dI)
            ys.append(jnp.sum(h * C_all[r], axis=0, keepdims=True))     # (1, dI)
    y = jnp.concatenate(ys, axis=0) + d_ref[0] * xc                     # (BL, dI)
    y = y * _silu(z)                                                    # gate

    seq_ref[...] = jnp.dot(y.astype(jnp.bfloat16), out_w_ref[0],
                           preferred_element_type=jnp.float32)          # (BL, Dm)

    # ---- epilogue (last layer only): AdaptiveAvgPool1d over time + Linear + softmax,
    #      written into a 128-lane-dense slab (padded logits carry -1e30 bias -> prob 0).
    @pl.when(layer == n_layers - 1)
    def _():
        pooled_t = jnp.mean(seq_ref[...].reshape(B, Tn, Dm), axis=1)    # (B, Dm)
        logits = (jnp.dot(pooled_t.astype(jnp.bfloat16), cls_w_ref[...],
                          preferred_element_type=jnp.float32) + cls_b_ref[...])
        m = jnp.max(logits, axis=-1, keepdims=True)
        e = jnp.exp(logits - m)
        o_ref[...] = e * pl.reciprocal(jnp.sum(e, axis=-1, keepdims=True), approx=True)


# --------------------------- pallas_call wrappers -----------------------------
def pallas_patchify_ln(patches, wT, b, gamma, beta):
    M, Kp = patches.shape
    F = wT.shape[1]
    # TODO(synk): row-tile (e.g. 512-row "parallel" blocks) at convnext_base/231x231 scale.
    return pl.pallas_call(
        _patchify_ln_kernel,
        out_shape=jax.ShapeDtypeStruct((M, F), jnp.float32),
        grid=(1,),
        in_specs=[pl.BlockSpec((M, Kp), lambda i: (0, 0)),
                  pl.BlockSpec((Kp, F), lambda i: (0, 0)),
                  pl.BlockSpec((1, F), lambda i: (0, 0)),
                  pl.BlockSpec((1, F), lambda i: (0, 0)),
                  pl.BlockSpec((1, F), lambda i: (0, 0))],
        out_specs=pl.BlockSpec((M, F), lambda i: (0, 0)),
    )(patches, wT, b, gamma, beta)


def pallas_temporal_stack(feats3, p, batch, time_steps):
    """feats3: (B*T, HW, F) -> (B, LANE) lane-padded softmax probabilities."""
    BT, HW, F = feats3.shape
    Tn = time_steps - 1
    BL = batch * Tn
    NL, Dm, dI = p["in_x_wT"].shape
    NCp = p["cls_wT"].shape[1]
    kernel = partial(_temporal_stack_kernel, batch=batch, time_steps=time_steps)
    const2 = lambda shape: pl.BlockSpec(shape, lambda l: (0, 0))
    layer3 = lambda shape: pl.BlockSpec((1,) + shape, lambda l: (l, 0, 0))
    return pl.pallas_call(
        kernel,
        out_shape=jax.ShapeDtypeStruct((batch, NCp), jnp.float32),
        grid=(NL,),
        in_specs=[pl.BlockSpec((BT, HW, F), lambda l: (0, 0, 0)),       # features (resident)
                  const2((F, Dm)), const2((F, Dm)),                     # compress halves
                  layer3((Dm, dI)), layer3((Dm, dI)),                   # in_proj x/z
                  layer3((D_CONV, dI)), layer3((1, dI)),                # conv w/b
                  layer3((dI, DT_RANK + 2 * D_STATE)),                  # x_proj (merged)
                  layer3((DT_RANK, dI)), layer3((1, dI)),               # dt_proj w/b
                  layer3((D_STATE, dI)), layer3((1, dI)),               # A^T, D
                  layer3((dI, Dm)),                                     # out_proj
                  const2((Dm, NCp)), const2((1, NCp))],                 # classifier
        out_specs=pl.BlockSpec((batch, NCp), lambda l: (0, 0)),
        scratch_shapes=[pltpu.VMEM((BL, Dm), jnp.float32)],             # resident sequence
        compiler_params=pltpu.CompilerParams(dimension_semantics=("arbitrary",)),
    )(feats3, p["cc_w1"], p["cc_w2"],
      p["in_x_wT"], p["in_z_wT"], p["conv_w"], p["conv_b"],
      p["xp_wT"], p["dt_wT"], p["dt_b"], p["A_T"], p["D"], p["out_wT"],
      p["cls_wT"], p["cls_b"])


# ------------------------------ forward ----------------------------------------
@jax.jit
def my_model_forward(x, params):
    """x: (B, T, C, H, W) float32 -> (B, NUM_CLASSES) softmax probabilities."""
    B, T, C, H, W = x.shape
    Hp, Wp = H // PATCH, W // PATCH

    # ConvNeXt stem stand-in.  NOTE: this 6-D transpose is a real HBM relayout (XLA
    # cannot fuse into the Pallas custom call); negligible at 28x28.
    xf = x.reshape(B * T, C, Hp, PATCH, Wp, PATCH)
    patches = xf.transpose(0, 2, 4, 1, 3, 5).reshape(B * T * Hp * Wp, C * PATCH * PATCH)
    feats = pallas_patchify_ln(patches, params["stem_wT"], params["stem_b"],
                               params["stem_ln_g"], params["stem_ln_b"])
    feats3 = feats.reshape(B * T, Hp * Wp, FEAT_DIM)

    # Pool + pair + compress + full Mamba stack + classifier: ONE fused pallas_call.
    probs_pad = pallas_temporal_stack(feats3, params, B, T)             # (B, LANE)
    return probs_pad[:, :NUM_CLASSES]


# ---------------------------- parameter init ----------------------------------
def init_params(key):
    keys = iter(jax.random.split(key, 4 + 6 * N_LAYERS))
    nxt = lambda: next(keys)
    p = {}
    # stem (ConvNeXt-style patchify conv, torch layout (F, C, P, P)) + LN
    stem_w = jax.random.normal(nxt(), (FEAT_DIM, IN_CHANS, PATCH, PATCH),
                               jnp.float32) / math.sqrt(IN_CHANS * PATCH * PATCH)
    p["stem_wT"] = stem_w.reshape(FEAT_DIM, -1).T.astype(jnp.bfloat16)  # (C*P*P, F)
    p["stem_b"] = jnp.zeros((1, FEAT_DIM), jnp.float32)
    p["stem_ln_g"] = jnp.ones((1, FEAT_DIM), jnp.float32)
    p["stem_ln_b"] = jnp.zeros((1, FEAT_DIM), jnp.float32)
    # conv_compress: Conv2d(2F -> MAMBA_DIM, 1x1, bias=False), torch weight (out, in)
    cc_w = jax.random.normal(nxt(), (MAMBA_DIM, 2 * FEAT_DIM),
                             jnp.float32) / math.sqrt(2 * FEAT_DIM)
    cc_wT = cc_w.T
    p["cc_w1"] = cc_wT[:FEAT_DIM].astype(jnp.bfloat16)   # acts on frame t
    p["cc_w2"] = cc_wT[FEAT_DIM:].astype(jnp.bfloat16)   # acts on frame t+1
    # Mamba layers, stacked along a leading layer axis for BlockSpec streaming
    in_x, in_z, conv_w, conv_b, xp_w, dt_w, dt_b, a_t, d_p, out_w = ([] for _ in range(10))
    for _ in range(N_LAYERS):
        in_proj_wT = jax.random.normal(nxt(), (MAMBA_DIM, 2 * D_INNER),
                                       jnp.float32) / math.sqrt(MAMBA_DIM)
        in_x.append(in_proj_wT[:, :D_INNER])
        in_z.append(in_proj_wT[:, D_INNER:])
        conv_w.append(jax.random.normal(nxt(), (D_CONV, D_INNER),
                                        jnp.float32) / math.sqrt(D_CONV))
        conv_b.append(jnp.zeros((1, D_INNER), jnp.float32))
        xp_w.append(jax.random.normal(nxt(), (D_INNER, DT_RANK + 2 * D_STATE),
                                      jnp.float32) / math.sqrt(D_INNER))
        s = DT_RANK ** -0.5
        dt_w.append(jax.random.uniform(nxt(), (DT_RANK, D_INNER), jnp.float32,
                                       minval=-s, maxval=s))
        dt = jnp.exp(jax.random.uniform(nxt(), (D_INNER,), jnp.float32)
                     * (math.log(0.1) - math.log(0.001)) + math.log(0.001))
        dt = jnp.maximum(dt, 1e-4)
        dt_b.append((dt + jnp.log(-jnp.expm1(-dt))).reshape(1, D_INNER))  # inv. softplus
        A_log = jnp.log(jnp.tile(jnp.arange(1, D_STATE + 1, dtype=jnp.float32)[None, :],
                                 (D_INNER, 1)))
        a_t.append((-jnp.exp(A_log)).T)                 # A = -exp(A_log), pre-transposed
        d_p.append(jnp.ones((1, D_INNER), jnp.float32))
        out_w.append(jax.random.normal(nxt(), (D_INNER, MAMBA_DIM),
                                       jnp.float32) / math.sqrt(D_INNER))
    p["in_x_wT"] = jnp.stack(in_x).astype(jnp.bfloat16)       # (NL, D, dI)
    p["in_z_wT"] = jnp.stack(in_z).astype(jnp.bfloat16)
    p["conv_w"] = jnp.stack(conv_w)                            # f32 (elementwise use)
    p["conv_b"] = jnp.stack(conv_b)
    p["xp_wT"] = jnp.stack(xp_w).astype(jnp.bfloat16)          # (NL, dI, R+2*dS) merged
    p["dt_wT"] = jnp.stack(dt_w).astype(jnp.bfloat16)
    p["dt_b"] = jnp.stack(dt_b)
    p["A_T"] = jnp.stack(a_t)
    p["D"] = jnp.stack(d_p)
    p["out_wT"] = jnp.stack(out_w).astype(jnp.bfloat16)
    # classifier Linear(MAMBA_DIM, NUM_CLASSES), lane-padded to 128 for dense stores;
    # padded lanes get -1e30 bias so softmax assigns them exactly 0.
    cls_w = jax.random.normal(nxt(), (MAMBA_DIM, NUM_CLASSES),
                              jnp.float32) / math.sqrt(MAMBA_DIM)
    p["cls_wT"] = (jnp.zeros((MAMBA_DIM, LANE), jnp.float32)
                   .at[:, :NUM_CLASSES].set(cls_w)).astype(jnp.bfloat16)
    p["cls_b"] = jnp.full((1, LANE), -1e30, jnp.float32).at[:, :NUM_CLASSES].set(0.0)
    return p


# ---------------------------------- main ---------------------------------------
if __name__ == "__main__":
    x = jax.random.normal(jax.random.PRNGKey(0),
                          (BATCH, TIME_STEPS, IN_CHANS, IMG, IMG), jnp.float32)
    params = init_params(jax.random.PRNGKey(1))
    out = my_model_forward(x, params)
    out = jax.block_until_ready(out)
    assert out.shape == (BATCH, NUM_CLASSES)
    assert bool(jnp.all(jnp.isfinite(out)))
    print("KERNEL_OK")
</pallas_src>

<mosaic_0001>
module attributes {stable_mosaic.version = 11 : i64} {
  func.func @_patchify_ln_kernel(%arg0: i32, %arg1: memref<294x48xf32, #tpu.memory_space<vmem>>, %arg2: memref<48x128xbf16, #tpu.memory_space<vmem>>, %arg3: memref<1x128xf32, #tpu.memory_space<vmem>>, %arg4: memref<1x128xf32, #tpu.memory_space<vmem>>, %arg5: memref<1x128xf32, #tpu.memory_space<vmem>>, %arg6: memref<294x128xf32, #tpu.memory_space<vmem>>) attributes {dimension_semantics = [#tpu.dimension_semantics<arbitrary>], iteration_bounds = array<i64: 1>, scalar_prefetch = 0 : i64, scratch_operands = 0 : i64, tpu.core_type = #tpu.core_type<tc>, window_params = [{pipeline_mode = #tpu.pipeline_mode<synchronous>, transform_indices = @transform_0, window_bounds = array<i64: 294, 48>}, {pipeline_mode = #tpu.pipeline_mode<synchronous>, transform_indices = @transform_1, window_bounds = array<i64: 48, 128>}, {pipeline_mode = #tpu.pipeline_mode<synchronous>, transform_indices = @transform_2, window_bounds = array<i64: 1, 128>}, {pipeline_mode = #tpu.pipeline_mode<synchronous>, transform_indices = @transform_3, window_bounds = array<i64: 1, 128>}, {pipeline_mode = #tpu.pipeline_mode<synchronous>, transform_indices = @transform_4, window_bounds = array<i64: 1, 128>}, {pipeline_mode = #tpu.pipeline_mode<synchronous>, transform_indices = @transform_5, window_bounds = array<i64: 294, 128>}]} {
    %c0 = arith.constant 0 : index
    %c0_0 = arith.constant 0 : index
    %0 = vector.load %arg1[%c0, %c0_0] : memref<294x48xf32, #tpu.memory_space<vmem>>, vector<294x48xf32>
    %1 = arith.truncf %0 : vector<294x48xf32> to vector<294x48xbf16>
    %c0_1 = arith.constant 0 : index
    %c0_2 = arith.constant 0 : index
    %2 = vector.load %arg2[%c0_1, %c0_2] : memref<48x128xbf16, #tpu.memory_space<vmem>>, vector<48x128xbf16>
    %cst = arith.constant dense<0.000000e+00> : vector<294x128xf32>
    %3 = tpu.matmul %1, %2, %cst {dimension_numbers = #tpu.dot_dimension_numbers<[1], [0], [0], [1], [0, 0, 1, 1], [], []>} : vector<294x48xbf16>, vector<48x128xbf16>, vector<294x128xf32> -> vector<294x128xf32>
    %c0_3 = arith.constant 0 : index
    %c0_4 = arith.constant 0 : index
    %4 = vector.load %arg3[%c0_3, %c0_4] : memref<1x128xf32, #tpu.memory_space<vmem>>, vector<1x128xf32>
    %5 = vector.broadcast %4 : vector<1x128xf32> to vector<294x128xf32>
    %6 = arith.addf %3, %5 : vector<294x128xf32>
    %cst_5 = arith.constant dense<0.000000e+00> : vector<294xf32>
    %7 = vector.multi_reduction <add>, %6, %cst_5 [1] : vector<294x128xf32> to vector<294xf32>
    %8 = vector.shape_cast %7 : vector<294xf32> to vector<294x1xf32>
    %cst_6 = arith.constant 1.280000e+02 : f32
    %9 = vector.broadcast %cst_6 : f32 to vector<294x1xf32>
    %10 = arith.divf %8, %9 : vector<294x1xf32>
    %11 = vector.broadcast %10 : vector<294x1xf32> to vector<294x128xf32>
    %12 = arith.subf %6, %11 : vector<294x128xf32>
    %13 = arith.mulf %12, %12 : vector<294x128xf32>
    %cst_7 = arith.constant dense<0.000000e+00> : vector<294xf32>
    %14 = vector.multi_reduction <add>, %13, %cst_7 [1] : vector<294x128xf32> to vector<294xf32>
    %15 = vector.shape_cast %14 : vector<294xf32> to vector<294x1xf32>
    %cst_8 = arith.constant 1.280000e+02 : f32
    %16 = vector.broadcast %cst_8 : f32 to vector<294x1xf32>
    %17 = arith.divf %15, %16 : vector<294x1xf32>
    %18 = vector.broadcast %10 : vector<294x1xf32> to vector<294x128xf32>
    %19 = arith.subf %6, %18 : vector<294x128xf32>
    %cst_9 = arith.constant 9.99999997E-7 : f32
    %20 = vector.broadcast %cst_9 : f32 to vector<294x1xf32>
    %21 = arith.addf %17, %20 : vector<294x1xf32>
    %22 = math.rsqrt %21 : vector<294x1xf32>
    %23 = vector.broadcast %22 : vector<294x1xf32> to vector<294x128xf32>
    %24 = arith.mulf %19, %23 : vector<294x128xf32>
    %c0_10 = arith.constant 0 : index
    %c0_11 = arith.constant 0 : index
    %25 = vector.load %arg4[%c0_10, %c0_11] : memref<1x128xf32, #tpu.memory_space<vmem>>, vector<1x128xf32>
    %26 = vector.broadcast %25 : vector<1x128xf32> to vector<294x128xf32>
    %27 = arith.mulf %24, %26 : vector<294x128xf32>
    %c0_12 = arith.constant 0 : index
    %c0_13 = arith.constant 0 : index
    %28 = vector.load %arg5[%c0_12, %c0_13] : memref<1x128xf32, #tpu.memory_space<vmem>>, vector<1x128xf32>
    %29 = vector.broadcast %28 : vector<1x128xf32> to vector<294x128xf32>
    %30 = arith.addf %27, %29 : vector<294x128xf32>
    %c0_14 = arith.constant 0 : index
    %c0_15 = arith.constant 0 : index
    %31 = vector.load %arg6[%c0_14, %c0_15] : memref<294x128xf32, #tpu.memory_space<vmem>>, vector<294x128xf32>
    tpu.vector_store %arg6[%c0_14, %c0_15], %30 {strides = array<i32>} : memref<294x128xf32, #tpu.memory_space<vmem>>, vector<294x128xf32>,
    return
  }
  func.func @transform_0(%arg0: i32) -> (i32, i32) {
    %c0_i32 = arith.constant 0 : i32
    %c0_i32_0 = arith.constant 0 : i32
    %c0_i32_1 = arith.constant 0 : i32
    return %c0_i32, %c0_i32_0 : i32, i32
  }
  func.func @transform_1(%arg0: i32) -> (i32, i32) {
    %c0_i32 = arith.constant 0 : i32
    %c0_i32_0 = arith.constant 0 : i32
    %c0_i32_1 = arith.constant 0 : i32
    return %c0_i32, %c0_i32_0 : i32, i32
  }
  func.func @transform_2(%arg0: i32) -> (i32, i32) {
    %c0_i32 = arith.constant 0 : i32
    %c0_i32_0 = arith.constant 0 : i32
    %c0_i32_1 = arith.constant 0 : i32
    return %c0_i32, %c0_i32_0 : i32, i32
  }
  func.func @transform_3(%arg0: i32) -> (i32, i32) {
    %c0_i32 = arith.constant 0 : i32
    %c0_i32_0 = arith.constant 0 : i32
    %c0_i32_1 = arith.constant 0 : i32
    return %c0_i32, %c0_i32_0 : i32, i32
  }
  func.func @transform_4(%arg0: i32) -> (i32, i32) {
    %c0_i32 = arith.constant 0 : i32
    %c0_i32_0 = arith.constant 0 : i32
    %c0_i32_1 = arith.constant 0 : i32
    return %c0_i32, %c0_i32_0 : i32, i32
  }
  func.func @transform_5(%arg0: i32) -> (i32, i32) {
    %c0_i32 = arith.constant 0 : i32
    %c0_i32_0 = arith.constant 0 : i32
    %c0_i32_1 = arith.constant 0 : i32
    return %c0_i32, %c0_i32_0 : i32, i32
  }
}

module attributes {stable_mosaic.version = 11 : i64} {
  func.func @_temporal_stack_kernel(%arg0: i32, %arg1: memref<6x49x128xf32, #tpu.memory_space<vmem>>, %arg2: memref<128x64xbf16, #tpu.memory_space<vmem>>, %arg3: memref<128x64xbf16, #tpu.memory_space<vmem>>, %arg4: memref<1x64x128xbf16, #tpu.memory_space<vmem>>, %arg5: memref<1x64x128xbf16, #tpu.memory_space<vmem>>, %arg6: memref<1x4x128xf32, #tpu.memory_space<vmem>>, %arg7: memref<1x1x128xf32, #tpu.memory_space<vmem>>, %arg8: memref<1x128x36xbf16, #tpu.memory_space<vmem>>, %arg9: memref<1x4x128xbf16, #tpu.memory_space<vmem>>, %arg10: memref<1x1x128xf32, #tpu.memory_space<vmem>>, %arg11: memref<1x16x128xf32, #tpu.memory_space<vmem>>, %arg12: memref<1x1x128xf32, #tpu.memory_space<vmem>>, %arg13: memref<1x128x64xbf16, #tpu.memory_space<vmem>>, %arg14: memref<64x128xbf16, #tpu.memory_space<vmem>>, %arg15: memref<1x128xf32, #tpu.memory_space<vmem>>, %arg16: memref<2x128xf32, #tpu.memory_space<vmem>>, %arg17: memref<4x64xf32, #tpu.memory_space<vmem>>) attributes {dimension_semantics = [#tpu.dimension_semantics<arbitrary>], iteration_bounds = array<i64: 4>, scalar_prefetch = 0 : i64, scratch_operands = 1 : i64, tpu.core_type = #tpu.core_type<tc>, window_params = [{pipeline_mode = #tpu.pipeline_mode<synchronous>, transform_indices = @transform_0, window_bounds = array<i64: 6, 49, 128>}, {pipeline_mode = #tpu.pipeline_mode<synchronous>, transform_indices = @transform_1, window_bounds = array<i64: 128, 64>}, {pipeline_mode = #tpu.pipeline_mode<synchronous>, transform_indices = @transform_2, window_bounds = array<i64: 128, 64>}, {transform_indices = @transform_3, window_bounds = array<i64: 1, 64, 128>}, {transform_indices = @transform_4, window_bounds = array<i64: 1, 64, 128>}, {transform_indices = @transform_5, window_bounds = array<i64: 1, 4, 128>}, {transform_indices = @transform_6, window_bounds = array<i64: 1, 1, 128>}, {transform_indices = @transform_7, window_bounds = array<i64: 1, 128, 36>}, {transform_indices = @transform_8, window_bounds = array<i64: 1, 4, 128>}, {transform_indices = @transform_9, window_bounds = array<i64: 1, 1, 128>}, {transform_indices = @transform_10, window_bounds = array<i64: 1, 16, 128>}, {transform_indices = @transform_11, window_bounds = array<i64: 1, 1, 128>}, {transform_indices = @transform_12, window_bounds = array<i64: 1, 128, 64>}, {pipeline_mode = #tpu.pipeline_mode<synchronous>, transform_indices = @transform_13, window_bounds = array<i64: 64, 128>}, {pipeline_mode = #tpu.pipeline_mode<synchronous>, transform_indices = @transform_14, window_bounds = array<i64: 1, 128>}, {pipeline_mode = #tpu.pipeline_mode<synchronous>, transform_indices = @transform_15, window_bounds = array<i64: 2, 128>}]} {
    %c0_i32 = arith.constant 0 : i32
    %0 = arith.cmpi eq, %arg0, %c0_i32 : i32
    %1 = arith.extui %0 : i1 to i32
    %c0_i32_0 = arith.constant 0 : i32
    %2 = arith.cmpi ne, %1, %c0_i32_0 : i32
    scf.if %2 {
      %c0_53 = arith.constant 0 : index
      %c0_54 = arith.constant 0 : index
      %c0_55 = arith.constant 0 : index
      %152 = vector.load %arg1[%c0_53, %c0_54, %c0_55] : memref<6x49x128xf32, #tpu.memory_space<vmem>>, vector<6x49x128xf32>
      %cst_56 = arith.constant dense<0.000000e+00> : vector<6x128xf32>
      %153 = vector.multi_reduction <add>, %152, %cst_56 [1] : vector<6x49x128xf32> to vector<6x128xf32>
      %cst_57 = arith.constant 4.900000e+01 : f32
      %154 = vector.broadcast %cst_57 : f32 to vector<6x128xf32>
      %155 = arith.divf %153, %154 : vector<6x128xf32>
      %156 = vector.shape_cast %155 : vector<6x128xf32> to vector<2x3x128xf32>
      %157 = vector.extract_strided_slice %156 {offsets = [0, 0, 0], sizes = [2, 2, 128], strides = [1, 1, 1]} : vector<2x3x128xf32> to vector<2x2x128xf32>
      %158 = vector.shape_cast %157 : vector<2x2x128xf32> to vector<4x128xf32>
      %159 = arith.truncf %158 : vector<4x128xf32> to vector<4x128xbf16>
      %160 = vector.extract_strided_slice %156 {offsets = [0, 1, 0], sizes = [2, 2, 128], strides = [1, 1, 1]} : vector<2x3x128xf32> to vector<2x2x128xf32>
      %161 = vector.shape_cast %160 : vector<2x2x128xf32> to vector<4x128xf32>
      %162 = arith.truncf %161 : vector<4x128xf32> to vector<4x128xbf16>
      %c0_58 = arith.constant 0 : index
      %c0_59 = arith.constant 0 : index
      %163 = vector.load %arg2[%c0_58, %c0_59] : memref<128x64xbf16, #tpu.memory_space<vmem>>, vector<128x64xbf16>
      %cst_60 = arith.constant dense<0.000000e+00> : vector<4x64xf32>
      %164 = tpu.matmul %159, %163, %cst_60 {dimension_numbers = #tpu.dot_dimension_numbers<[1], [0], [0], [1], [0, 0, 1, 1], [], []>} : vector<4x128xbf16>, vector<128x64xbf16>, vector<4x64xf32> -> vector<4x64xf32>
      %c0_61 = arith.constant 0 : index
      %c0_62 = arith.constant 0 : index
      %165 = vector.load %arg3[%c0_61, %c0_62] : memref<128x64xbf16, #tpu.memory_space<vmem>>, vector<128x64xbf16>
      %cst_63 = arith.constant dense<0.000000e+00> : vector<4x64xf32>
      %166 = tpu.matmul %162, %165, %cst_63 {dimension_numbers = #tpu.dot_dimension_numbers<[1], [0], [0], [1], [0, 0, 1, 1], [], []>} : vector<4x128xbf16>, vector<128x64xbf16>, vector<4x64xf32> -> vector<4x64xf32>
      %167 = arith.addf %164, %166 : vector<4x64xf32>
      %c0_64 = arith.constant 0 : index
      %c0_65 = arith.constant 0 : index
      %168 = vector.load %arg17[%c0_64, %c0_65] : memref<4x64xf32, #tpu.memory_space<vmem>>, vector<4x64xf32>
      tpu.vector_store %arg17[%c0_64, %c0_65], %167 {strides = array<i32>} : memref<4x64xf32, #tpu.memory_space<vmem>>, vector<4x64xf32>,
    } else {
    }
    %c0 = arith.constant 0 : index
    %c0_1 = arith.constant 0 : index
    %3 = vector.load %arg17[%c0, %c0_1] : memref<4x64xf32, #tpu.memory_space<vmem>>, vector<4x64xf32>
    %4 = arith.truncf %3 : vector<4x64xf32> to vector<4x64xbf16>
    %c0_2 = arith.constant 0 : index
    %c0_3 = arith.constant 0 : index
    %c0_4 = arith.constant 0 : index
    %5 = vector.load %arg4[%c0_2, %c0_3, %c0_4] : memref<1x64x128xbf16, #tpu.memory_space<vmem>>, vector<1x64x128xbf16>
    %6 = vector.shape_cast %5 : vector<1x64x128xbf16> to vector<64x128xbf16>
    %cst = arith.constant dense<0.000000e+00> : vector<4x128xf32>
    %7 = tpu.matmul %4, %6, %cst {dimension_numbers = #tpu.dot_dimension_numbers<[1], [0], [0], [1], [0, 0, 1, 1], [], []>} : vector<4x64xbf16>, vector<64x128xbf16>, vector<4x128xf32> -> vector<4x128xf32>
    %c0_5 = arith.constant 0 : index
    %c0_6 = arith.constant 0 : index
    %c0_7 = arith.constant 0 : index
    %8 = vector.load %arg5[%c0_5, %c0_6, %c0_7] : memref<1x64x128xbf16, #tpu.memory_space<vmem>>, vector<1x64x128xbf16>
    %9 = vector.shape_cast %8 : vector<1x64x128xbf16> to vector<64x128xbf16>
    %cst_8 = arith.constant dense<0.000000e+00> : vector<4x128xf32>
    %10 = tpu.matmul %4, %9, %cst_8 {dimension_numbers = #tpu.dot_dimension_numbers<[1], [0], [0], [1], [0, 0, 1, 1], [], []>} : vector<4x64xbf16>, vector<64x128xbf16>, vector<4x128xf32> -> vector<4x128xf32>
    %c0_9 = arith.constant 0 : index
    %c0_10 = arith.constant 0 : index
    %c0_11 = arith.constant 0 : index
    %11 = vector.load %arg6[%c0_9, %c0_10, %c0_11] : memref<1x4x128xf32, #tpu.memory_space<vmem>>, vector<1x4x128xf32>
    %12 = vector.shape_cast %11 : vector<1x4x128xf32> to vector<4x128xf32>
    %13 = vector.shape_cast %7 : vector<4x128xf32> to vector<2x2x128xf32>
    %cst_12 = arith.constant 0.000000e+00 : f32
    %14 = vector.broadcast %cst_12 : f32 to vector<2x1x128xf32>
    %15 = tpu.concatenate %14, %13 in 1 : vector<2x1x128xf32>, vector<2x2x128xf32> -> vector<2x3x128xf32>
    %cst_13 = arith.constant 0.000000e+00 : f32
    %16 = vector.broadcast %cst_13 : f32 to vector<2x2x128xf32>
    %c0_14 = arith.constant 0 : index
    %c0_15 = arith.constant 0 : index
    %c0_16 = arith.constant 0 : index
    %17 = vector.load %arg7[%c0_14, %c0_15, %c0_16] : memref<1x1x128xf32, #tpu.memory_space<vmem>>, vector<1x1x128xf32>
    %18 = vector.shape_cast %17 : vector<1x1x128xf32> to vector<1x128xf32>
    %19 = vector.shape_cast %18 : vector<1x128xf32> to vector<1x1x128xf32>
    %20 = vector.broadcast %19 : vector<1x1x128xf32> to vector<2x2x128xf32>
    %21 = arith.addf %16, %20 : vector<2x2x128xf32>
    %22 = vector.extract_strided_slice %15 {offsets = [0, 0, 0], sizes = [2, 2, 128], strides = [1, 1, 1]} : vector<2x3x128xf32> to vector<2x2x128xf32>
    %23 = vector.extract_strided_slice %12 {offsets = [2, 0], sizes = [1, 128], strides = [1, 1]} : vector<4x128xf32> to vector<1x128xf32>
    %24 = vector.shape_cast %23 : vector<1x128xf32> to vector<1x1x128xf32>
    %25 = vector.broadcast %24 : vector<1x1x128xf32> to vector<2x2x128xf32>
    %26 = arith.mulf %22, %25 : vector<2x2x128xf32>
    %27 = arith.addf %21, %26 : vector<2x2x128xf32>
    %28 = vector.extract_strided_slice %15 {offsets = [0, 1, 0], sizes = [2, 2, 128], strides = [1, 1, 1]} : vector<2x3x128xf32> to vector<2x2x128xf32>
    %29 = vector.extract_strided_slice %12 {offsets = [3, 0], sizes = [1, 128], strides = [1, 1]} : vector<4x128xf32> to vector<1x128xf32>
    %30 = vector.shape_cast %29 : vector<1x128xf32> to vector<1x1x128xf32>
    %31 = vector.broadcast %30 : vector<1x1x128xf32> to vector<2x2x128xf32>
    %32 = arith.mulf %28, %31 : vector<2x2x128xf32>
    %33 = arith.addf %27, %32 : vector<2x2x128xf32>
    %34 = vector.shape_cast %33 : vector<2x2x128xf32> to vector<4x128xf32>
    %cst_17 = arith.constant 0.000000e+00 : f32
    %35 = vector.broadcast %cst_17 : f32 to vector<4x128xf32>
    %36 = arith.subf %35, %34 : vector<4x128xf32>
    %37 = math.exp %36 : vector<4x128xf32>
    %cst_18 = arith.constant 1.000000e+00 : f32
    %38 = vector.broadcast %cst_18 : f32 to vector<4x128xf32>
    %39 = arith.addf %38, %37 : vector<4x128xf32>
    %40 = tpu.reciprocal %39 {approx = true} : vector<4x128xf32> -> vector<4x128xf32>
    %41 = arith.mulf %34, %40 : vector<4x128xf32>
    %42 = arith.truncf %41 : vector<4x128xf32> to vector<4x128xbf16>
    %c0_19 = arith.constant 0 : index
    %c0_20 = arith.constant 0 : index
    %c0_21 = arith.constant 0 : index
    %43 = vector.load %arg8[%c0_19, %c0_20, %c0_21] : memref<1x128x36xbf16, #tpu.memory_space<vmem>>, vector<1x128x36xbf16>
    %44 = vector.shape_cast %43 : vector<1x128x36xbf16> to vector<128x36xbf16>
    %cst_22 = arith.constant dense<0.000000e+00> : vector<4x36xf32>
    %45 = tpu.matmul %42, %44, %cst_22 {dimension_numbers = #tpu.dot_dimension_numbers<[1], [0], [0], [1], [0, 0, 1, 1], [], []>} : vector<4x128xbf16>, vector<128x36xbf16>, vector<4x36xf32> -> vector<4x36xf32>
    %46 = vector.extract_strided_slice %45 {offsets = [0, 0], sizes = [4, 4], strides = [1, 1]} : vector<4x36xf32> to vector<4x4xf32>
    %47 = vector.extract_strided_slice %45 {offsets = [0, 4], sizes = [4, 16], strides = [1, 1]} : vector<4x36xf32> to vector<4x16xf32>
    %48 = vector.extract_strided_slice %45 {offsets = [0, 20], sizes = [4, 16], strides = [1, 1]} : vector<4x36xf32> to vector<4x16xf32>
    %49 = arith.truncf %46 : vector<4x4xf32> to vector<4x4xbf16>
    %c0_23 = arith.constant 0 : index
    %c0_24 = arith.constant 0 : index
    %c0_25 = arith.constant 0 : index
    %50 = vector.load %arg9[%c0_23, %c0_24, %c0_25] : memref<1x4x128xbf16, #tpu.memory_space<vmem>>, vector<1x4x128xbf16>
    %51 = vector.shape_cast %50 : vector<1x4x128xbf16> to vector<4x128xbf16>
    %cst_26 = arith.constant dense<0.000000e+00> : vector<4x128xf32>
    %52 = tpu.matmul %49, %51, %cst_26 {dimension_numbers = #tpu.dot_dimension_numbers<[1], [0], [0], [1], [0, 0, 1, 1], [], []>} : vector<4x4xbf16>, vector<4x128xbf16>, vector<4x128xf32> -> vector<4x128xf32>
    %c0_27 = arith.constant 0 : index
    %c0_28 = arith.constant 0 : index
    %c0_29 = arith.constant 0 : index
    %53 = vector.load %arg10[%c0_27, %c0_28, %c0_29] : memref<1x1x128xf32, #tpu.memory_space<vmem>>, vector<1x1x128xf32>
    %54 = vector.shape_cast %53 : vector<1x1x128xf32> to vector<1x128xf32>
    %55 = vector.broadcast %54 : vector<1x128xf32> to vector<4x128xf32>
    %56 = arith.addf %52, %55 : vector<4x128xf32>
    %cst_30 = arith.constant 0.000000e+00 : f32
    %57 = vector.broadcast %cst_30 : f32 to vector<4x128xf32>
    %58 = arith.maximumf %56, %57 : vector<4x128xf32>
    %59 = math.absf %56 : vector<4x128xf32>
    %cst_31 = arith.constant 0.000000e+00 : f32
    %60 = vector.broadcast %cst_31 : f32 to vector<4x128xf32>
    %61 = arith.subf %60, %59 : vector<4x128xf32>
    %62 = math.exp %61 : vector<4x128xf32>
    %63 = math.log1p %62 : vector<4x128xf32>
    %64 = arith.addf %58, %63 : vector<4x128xf32>
    %c0_32 = arith.constant 0 : index
    %c0_33 = arith.constant 0 : index
    %c0_34 = arith.constant 0 : index
    %65 = vector.load %arg11[%c0_32, %c0_33, %c0_34] : memref<1x16x128xf32, #tpu.memory_space<vmem>>, vector<1x16x128xf32>
    %66 = vector.shape_cast %65 : vector<1x16x128xf32> to vector<16x128xf32>
    %67 = arith.mulf %64, %41 : vector<4x128xf32>
    %68 = vector.shape_cast %64 : vector<4x128xf32> to vector<4x1x128xf32>
    %69 = vector.shape_cast %66 : vector<16x128xf32> to vector<1x16x128xf32>
    %70 = vector.broadcast %68 : vector<4x1x128xf32> to vector<4x16x128xf32>
    %71 = vector.broadcast %69 : vector<1x16x128xf32> to vector<4x16x128xf32>
    %72 = arith.mulf %70, %71 : vector<4x16x128xf32>
    %73 = math.exp %72 : vector<4x16x128xf32>
    %74 = vector.shape_cast %47 : vector<4x16xf32> to vector<4x16x1xf32>
    %75 = vector.shape_cast %67 : vector<4x128xf32> to vector<4x1x128xf32>
    %76 = vector.broadcast %74 : vector<4x16x1xf32> to vector<4x16x128xf32>
    %77 = vector.broadcast %75 : vector<4x1x128xf32> to vector<4x16x128xf32>
    %78 = arith.mulf %76, %77 : vector<4x16x128xf32>
    %79 = vector.shape_cast %48 : vector<4x16xf32> to vector<4x16x1xf32>
    %cst_35 = arith.constant 0.000000e+00 : f32
    %80 = vector.broadcast %cst_35 : f32 to vector<16x128xf32>
    %81 = vector.extract_strided_slice %73 {offsets = [0, 0, 0], sizes = [1, 16, 128], strides = [1, 1, 1]} : vector<4x16x128xf32> to vector<1x16x128xf32>
    %82 = vector.shape_cast %81 : vector<1x16x128xf32> to vector<16x128xf32>
    %83 = arith.mulf %82, %80 : vector<16x128xf32>
    %84 = vector.extract_strided_slice %78 {offsets = [0, 0, 0], sizes = [1, 16, 128], strides = [1, 1, 1]} : vector<4x16x128xf32> to vector<1x16x128xf32>
    %85 = vector.shape_cast %84 : vector<1x16x128xf32> to vector<16x128xf32>
    %86 = arith.addf %83, %85 : vector<16x128xf32>
    %87 = vector.extract_strided_slice %79 {offsets = [0, 0, 0], sizes = [1, 16, 1], strides = [1, 1, 1]} : vector<4x16x1xf32> to vector<1x16x1xf32>
    %88 = vector.shape_cast %87 : vector<1x16x1xf32> to vector<16x1xf32>
    %89 = vector.broadcast %88 : vector<16x1xf32> to vector<16x128xf32>
    %90 = arith.mulf %86, %89 : vector<16x128xf32>
    %cst_36 = arith.constant dense<0.000000e+00> : vector<128xf32>
    %91 = vector.multi_reduction <add>, %90, %cst_36 [0] : vector<16x128xf32> to vector<128xf32>
    %92 = vector.shape_cast %91 : vector<128xf32> to vector<1x128xf32>
    %93 = vector.extract_strided_slice %73 {offsets = [1, 0, 0], sizes = [1, 16, 128], strides = [1, 1, 1]} : vector<4x16x128xf32> to vector<1x16x128xf32>
    %94 = vector.shape_cast %93 : vector<1x16x128xf32> to vector<16x128xf32>
    %95 = arith.mulf %94, %86 : vector<16x128xf32>
    %96 = vector.extract_strided_slice %78 {offsets = [1, 0, 0], sizes = [1, 16, 128], strides = [1, 1, 1]} : vector<4x16x128xf32> to vector<1x16x128xf32>
    %97 = vector.shape_cast %96 : vector<1x16x128xf32> to vector<16x128xf32>
    %98 = arith.addf %95, %97 : vector<16x128xf32>
    %99 = vector.extract_strided_slice %79 {offsets = [1, 0, 0], sizes = [1, 16, 1], strides = [1, 1, 1]} : vector<4x16x1xf32> to vector<1x16x1xf32>
    %100 = vector.shape_cast %99 : vector<1x16x1xf32> to vector<16x1xf32>
    %101 = vector.broadcast %100 : vector<16x1xf32> to vector<16x128xf32>
    %102 = arith.mulf %98, %101 : vector<16x128xf32>
    %cst_37 = arith.constant dense<0.000000e+00> : vector<128xf32>
    %103 = vector.multi_reduction <add>, %102, %cst_37 [0] : vector<16x128xf32> to vector<128xf32>
    %104 = vector.shape_cast %103 : vector<128xf32> to vector<1x128xf32>
    %cst_38 = arith.constant 0.000000e+00 : f32
    %105 = vector.broadcast %cst_38 : f32 to vector<16x128xf32>
    %106 = vector.extract_strided_slice %73 {offsets = [2, 0, 0], sizes = [1, 16, 128], strides = [1, 1, 1]} : vector<4x16x128xf32> to vector<1x16x128xf32>
    %107 = vector.shape_cast %106 : vector<1x16x128xf32> to vector<16x128xf32>
    %108 = arith.mulf %107, %105 : vector<16x128xf32>
    %109 = vector.extract_strided_slice %78 {offsets = [2, 0, 0], sizes = [1, 16, 128], strides = [1, 1, 1]} : vector<4x16x128xf32> to vector<1x16x128xf32>
    %110 = vector.shape_cast %109 : vector<1x16x128xf32> to vector<16x128xf32>
    %111 = arith.addf %108, %110 : vector<16x128xf32>
    %112 = vector.extract_strided_slice %79 {offsets = [2, 0, 0], sizes = [1, 16, 1], strides = [1, 1, 1]} : vector<4x16x1xf32> to vector<1x16x1xf32>
    %113 = vector.shape_cast %112 : vector<1x16x1xf32> to vector<16x1xf32>
    %114 = vector.broadcast %113 : vector<16x1xf32> to vector<16x128xf32>
    %115 = arith.mulf %111, %114 : vector<16x128xf32>
    %cst_39 = arith.constant dense<0.000000e+00> : vector<128xf32>
    %116 = vector.multi_reduction <add>, %115, %cst_39 [0] : vector<16x128xf32> to vector<128xf32>
    %117 = vector.shape_cast %116 : vector<128xf32> to vector<1x128xf32>
    %118 = vector.extract_strided_slice %73 {offsets = [3, 0, 0], sizes = [1, 16, 128], strides = [1, 1, 1]} : vector<4x16x128xf32> to vector<1x16x128xf32>
    %119 = vector.shape_cast %118 : vector<1x16x128xf32> to vector<16x128xf32>
    %120 = arith.mulf %119, %111 : vector<16x128xf32>
    %121 = vector.extract_strided_slice %78 {offsets = [3, 0, 0], sizes = [1, 16, 128], strides = [1, 1, 1]} : vector<4x16x128xf32> to vector<1x16x128xf32>
    %122 = vector.shape_cast %121 : vector<1x16x128xf32> to vector<16x128xf32>
    %123 = arith.addf %120, %122 : vector<16x128xf32>
    %124 = vector.extract_strided_slice %79 {offsets = [3, 0, 0], sizes = [1, 16, 1], strides = [1, 1, 1]} : vector<4x16x1xf32> to vector<1x16x1xf32>
    %125 = vector.shape_cast %124 : vector<1x16x1xf32> to vector<16x1xf32>
    %126 = vector.broadcast %125 : vector<16x1xf32> to vector<16x128xf32>
    %127 = arith.mulf %123, %126 : vector<16x128xf32>
    %cst_40 = arith.constant dense<0.000000e+00> : vector<128xf32>
    %128 = vector.multi_reduction <add>, %127, %cst_40 [0] : vector<16x128xf32> to vector<128xf32>
    %129 = vector.shape_cast %128 : vector<128xf32> to vector<1x128xf32>
    %130 = tpu.concatenate %92, %104, %117, %129 in 0 : vector<1x128xf32>, vector<1x128xf32>, vector<1x128xf32>, vector<1x128xf32> -> vector<4x128xf32>
    %c0_41 = arith.constant 0 : index
    %c0_42 = arith.constant 0 : index
    %c0_43 = arith.constant 0 : index
    %131 = vector.load %arg12[%c0_41, %c0_42, %c0_43] : memref<1x1x128xf32, #tpu.memory_space<vmem>>, vector<1x1x128xf32>
    %132 = vector.shape_cast %131 : vector<1x1x128xf32> to vector<1x128xf32>
    %133 = vector.broadcast %132 : vector<1x128xf32> to vector<4x128xf32>
    %134 = arith.mulf %133, %41 : vector<4x128xf32>
    %135 = arith.addf %130, %134 : vector<4x128xf32>
    %cst_44 = arith.constant 0.000000e+00 : f32
    %136 = vector.broadcast %cst_44 : f32 to vector<4x128xf32>
    %137 = arith.subf %136, %10 : vector<4x128xf32>
    %138 = math.exp %137 : vector<4x128xf32>
    %cst_45 = arith.constant 1.000000e+00 : f32
    %139 = vector.broadcast %cst_45 : f32 to vector<4x128xf32>
    %140 = arith.addf %139, %138 : vector<4x128xf32>
    %141 = tpu.reciprocal %140 {approx = true} : vector<4x128xf32> -> vector<4x128xf32>
    %142 = arith.mulf %10, %141 : vector<4x128xf32>
    %143 = arith.mulf %135, %142 : vector<4x128xf32>
    %144 = arith.truncf %143 : vector<4x128xf32> to vector<4x128xbf16>
    %c0_46 = arith.constant 0 : index
    %c0_47 = arith.constant 0 : index
    %c0_48 = arith.constant 0 : index
    %145 = vector.load %arg13[%c0_46, %c0_47, %c0_48] : memref<1x128x64xbf16, #tpu.memory_space<vmem>>, vector<1x128x64xbf16>
    %146 = vector.shape_cast %145 : vector<1x128x64xbf16> to vector<128x64xbf16>
    %cst_49 = arith.constant dense<0.000000e+00> : vector<4x64xf32>
    %147 = tpu.matmul %144, %146, %cst_49 {dimension_numbers = #tpu.dot_dimension_numbers<[1], [0], [0], [1], [0, 0, 1, 1], [], []>} : vector<4x128xbf16>, vector<128x64xbf16>, vector<4x64xf32> -> vector<4x64xf32>
    %c0_50 = arith.constant 0 : index
    %c0_51 = arith.constant 0 : index
    %148 = vector.load %arg17[%c0_50, %c0_51] : memref<4x64xf32, #tpu.memory_space<vmem>>, vector<4x64xf32>
    tpu.vector_store %arg17[%c0_50, %c0_51], %147 {strides = array<i32>} : memref<4x64xf32, #tpu.memory_space<vmem>>, vector<4x64xf32>,
    %c3_i32 = arith.constant 3 : i32
    %149 = arith.cmpi eq, %arg0, %c3_i32 : i32
    %150 = arith.extui %149 : i1 to i32
    %c0_i32_52 = arith.constant 0 : i32
    %151 = arith.cmpi ne, %150, %c0_i32_52 : i32
    scf.if %151 {
      %c0_53 = arith.constant 0 : index
      %c0_54 = arith.constant 0 : index
      %152 = vector.load %arg17[%c0_53, %c0_54] : memref<4x64xf32, #tpu.memory_space<vmem>>, vector<4x64xf32>
      %153 = vector.shape_cast %152 : vector<4x64xf32> to vector<2x2x64xf32>
      %cst_55 = arith.constant dense<0.000000e+00> : vector<2x64xf32>
      %154 = vector.multi_reduction <add>, %153, %cst_55 [1] : vector<2x2x64xf32> to vector<2x64xf32>
      %cst_56 = arith.constant 2.000000e+00 : f32
      %155 = vector.broadcast %cst_56 : f32 to vector<2x64xf32>
      %156 = arith.divf %154, %155 : vector<2x64xf32>
      %157 = arith.truncf %156 : vector<2x64xf32> to vector<2x64xbf16>
      %c0_57 = arith.constant 0 : index
      %c0_58 = arith.constant 0 : index
      %158 = vector.load %arg14[%c0_57, %c0_58] : memref<64x128xbf16, #tpu.memory_space<vmem>>, vector<64x128xbf16>
      %cst_59 = arith.constant dense<0.000000e+00> : vector<2x128xf32>
      %159 = tpu.matmul %157, %158, %cst_59 {dimension_numbers = #tpu.dot_dimension_numbers<[1], [0], [0], [1], [0, 0, 1, 1], [], []>} : vector<2x64xbf16>, vector<64x128xbf16>, vector<2x128xf32> -> vector<2x128xf32>
      %c0_60 = arith.constant 0 : index
      %c0_61 = arith.constant 0 : index
      %160 = vector.load %arg15[%c0_60, %c0_61] : memref<1x128xf32, #tpu.memory_space<vmem>>, vector<1x128xf32>
      %161 = vector.broadcast %160 : vector<1x128xf32> to vector<2x128xf32>
      %162 = arith.addf %159, %161 : vector<2x128xf32>
      %cst_62 = arith.constant dense<0xFF800000> : vector<2xf32>
      %163 = vector.multi_reduction <maximumf>, %162, %cst_62 [1] : vector<2x128xf32> to vector<2xf32>
      %164 = vector.shape_cast %163 : vector<2xf32> to vector<2x1xf32>
      %165 = vector.broadcast %164 : vector<2x1xf32> to vector<2x128xf32>
      %166 = arith.subf %162, %165 : vector<2x128xf32>
      %167 = math.exp %166 : vector<2x128xf32>
      %cst_63 = arith.constant dense<0.000000e+00> : vector<2xf32>
      %168 = vector.multi_reduction <add>, %167, %cst_63 [1] : vector<2x128xf32> to vector<2xf32>
      %169 = vector.shape_cast %168 : vector<2xf32> to vector<2x1xf32>
      %170 = tpu.reciprocal %169 {approx = true} : vector<2x1xf32> -> vector<2x1xf32>
      %171 = vector.broadcast %170 : vector<2x1xf32> to vector<2x128xf32>
      %172 = arith.mulf %167, %171 : vector<2x128xf32>
      %c0_64 = arith.constant 0 : index
      %c0_65 = arith.constant 0 : index
      %173 = vector.load %arg16[%c0_64, %c0_65] : memref<2x128xf32, #tpu.memory_space<vmem>>, vector<2x128xf32>
      tpu.vector_store %arg16[%c0_64, %c0_65], %172 {strides = array<i32>} : memref<2x128xf32, #tpu.memory_space<vmem>>, vector<2x128xf32>,
    } else {
    }
    return
  }
  func.func @transform_0(%arg0: i32) -> (i32, i32, i32) {
    %c0_i32 = arith.constant 0 : i32
    %c0_i32_0 = arith.constant 0 : i32
    %c0_i32_1 = arith.constant 0 : i32
    %c0_i32_2 = arith.constant 0 : i32
    return %c0_i32, %c0_i32_0, %c0_i32_1 : i32, i32, i32
  }
  func.func @transform_1(%arg0: i32) -> (i32, i32) {
    %c0_i32 = arith.constant 0 : i32
    %c0_i32_0 = arith.constant 0 : i32
    %c0_i32_1 = arith.constant 0 : i32
    return %c0_i32, %c0_i32_0 : i32, i32
  }
  func.func @transform_2(%arg0: i32) -> (i32, i32) {
    %c0_i32 = arith.constant 0 : i32
    %c0_i32_0 = arith.constant 0 : i32
    %c0_i32_1 = arith.constant 0 : i32
    return %c0_i32, %c0_i32_0 : i32, i32
  }
  func.func @transform_3(%arg0: i32) -> (i32, i32, i32) {
    %c0_i32 = arith.constant 0 : i32
    %c0_i32_0 = arith.constant 0 : i32
    %c0_i32_1 = arith.constant 0 : i32
    return %arg0, %c0_i32, %c0_i32_0 : i32, i32, i32
  }
  func.func @transform_4(%arg0: i32) -> (i32, i32, i32) {
    %c0_i32 = arith.constant 0 : i32
    %c0_i32_0 = arith.constant 0 : i32
    %c0_i32_1 = arith.constant 0 : i32
    return %arg0, %c0_i32, %c0_i32_0 : i32, i32, i32
  }
  func.func @transform_5(%arg0: i32) -> (i32, i32, i32) {
    %c0_i32 = arith.constant 0 : i32
    %c0_i32_0 = arith.constant 0 : i32
    %c0_i32_1 = arith.constant 0 : i32
    return %arg0, %c0_i32, %c0_i32_0 : i32, i32, i32
  }
  func.func @transform_6(%arg0: i32) -> (i32, i32, i32) {
    %c0_i32 = arith.constant 0 : i32
    %c0_i32_0 = arith.constant 0 : i32
    %c0_i32_1 = arith.constant 0 : i32
    return %arg0, %c0_i32, %c0_i32_0 : i32, i32, i32
  }
  func.func @transform_7(%arg0: i32) -> (i32, i32, i32) {
    %c0_i32 = arith.constant 0 : i32
    %c0_i32_0 = arith.constant 0 : i32
    %c0_i32_1 = arith.constant 0 : i32
    return %arg0, %c0_i32, %c0_i32_0 : i32, i32, i32
  }
  func.func @transform_8(%arg0: i32) -> (i32, i32, i32) {
    %c0_i32 = arith.constant 0 : i32
    %c0_i32_0 = arith.constant 0 : i32
    %c0_i32_1 = arith.constant 0 : i32
    return %arg0, %c0_i32, %c0_i32_0 : i32, i32, i32
  }
  func.func @transform_9(%arg0: i32) -> (i32, i32, i32) {
    %c0_i32 = arith.constant 0 : i32
    %c0_i32_0 = arith.constant 0 : i32
    %c0_i32_1 = arith.constant 0 : i32
    return %arg0, %c0_i32, %c0_i32_0 : i32, i32, i32
  }
  func.func @transform_10(%arg0: i32) -> (i32, i32, i32) {
    %c0_i32 = arith.constant 0 : i32
    %c0_i32_0 = arith.constant 0 : i32
    %c0_i32_1 = arith.constant 0 : i32
    return %arg0, %c0_i32, %c0_i32_0 : i32, i32, i32
  }
  func.func @transform_11(%arg0: i32) -> (i32, i32, i32) {
    %c0_i32 = arith.constant 0 : i32
    %c0_i32_0 = arith.constant 0 : i32
    %c0_i32_1 = arith.constant 0 : i32
    return %arg0, %c0_i32, %c0_i32_0 : i32, i32, i32
  }
  func.func @transform_12(%arg0: i32) -> (i32, i32, i32) {
    %c0_i32 = arith.constant 0 : i32
    %c0_i32_0 = arith.constant 0 : i32
    %c0_i32_1 = arith.constant 0 : i32
    return %arg0, %c0_i32, %c0_i32_0 : i32, i32, i32
  }
  func.func @transform_13(%arg0: i32) -> (i32, i32) {
    %c0_i32 = arith.constant 0 : i32
    %c0_i32_0 = arith.constant 0 : i32
    %c0_i32_1 = arith.constant 0 : i32
    return %c0_i32, %c0_i32_0 : i32, i32
  }
  func.func @transform_14(%arg0: i32) -> (i32, i32) {
    %c0_i32 = arith.constant 0 : i32
    %c0_i32_0 = arith.constant 0 : i32
    %c0_i32_1 = arith.constant 0 : i32
    return %c0_i32, %c0_i32_0 : i32, i32
  }
  func.func @transform_15(%arg0: i32) -> (i32, i32) {
    %c0_i32 = arith.constant 0 : i32
    %c0_i32_0 = arith.constant 0 : i32
    %c0_i32_1 = arith.constant 0 : i32
    return %c0_i32, %c0_i32_0 : i32, i32
  }
}

</mosaic_0001>

<bundles_post_ra>
// kernel: my_model_forward.2
= control target key start
LH: loop header
LB: loop body
LE: loop exit
PB: predicated region body
PF: predicated region fallthrough
CT: control target
= control target key end

     0   :  { %v1104_v0 = vmov 0.0   ;;  %vm1105_vm0 = vmmov 0   ;;  %vm108_vm1 = vcmask 392192   ;;  %vm422_vm2 = vcmask 1045504   ;;  %s1891_s1 = inlined_call_operand.vmem [shape: bf16[48,128], index: 1, kind: input, shape index: {}]   ;;  %s1892_s0 = inlined_call_operand.vmem [shape: f32[294,48], index: 0, kind: input, shape index: {}]   ;;  %s1893_s2 = inlined_call_operand.vmem [shape: f32[1,128], index: 2, kind: input, shape index: {}]   ;;  %s1894_s3 = inlined_call_operand.vmem [shape: f32[1,128], index: 3, kind: input, shape index: {}]   ;;  %s1895_s4 = inlined_call_operand.vmem [shape: f32[1,128], index: 4, kind: input, shape index: {}]   ;;  %s1896_s5 = inlined_call_operand.vmem [shape: f32[294,128], index: 5, kind: output, shape index: {}]  }
   0x1   :  { %937 = vmatprep.subr.bf16.mxu0 %v1104_v0  ;;  %1019 = vmatprep.subr.bf16.mxu1 %v1104_v0  ;;  %v1027_v1 = vld [vmem:[%s1891_s1] sm:$0xff]   ;;  %v1028_v2 = vld [vmem:[%s1891_s1 + $0x8] sm:$0xff]   ;;  %v1029_v3 = vld [vmem:[%s1891_s1 + $0x10] sm:$0xff]  }
   0x2   :  { %943 = vmatprep.mubr.msk.bf16.mxu0 %vm1105_vm0, %v1104_v0  ;;  %983 = vmatprep.mubr.msk.bf16.mxu1 %vm1105_vm0, %v1104_v0  ;;  %v21_v4 = vld [vmem:[%s1892_s0] sm:$0xff]  ;;  %v22_v5 = vld [vmem:[%s1892_s0 + $0x8] sm:$0xff]  ;;  %v23_v10 = vld [vmem:[%s1892_s0 + $0x10] sm:$0xff] }
   0x3   :  { %938 = vmatpush3.bf16.msra.mxu0 %v1027_v1  ;;  %1022 = vmatpush3.bf16.msra.mxu1 %v1027_v1  ;;  %v41_v6 = vld [vmem:[%s1892_s0 + $0xa0] sm:$0xff]  ;;  %v42_v7 = vld [vmem:[%s1892_s0 + $0xa8] sm:$0xff]  ;;  %v58_v8 = vpack.c.bf16 %v22_v5, %v21_v4  ;;  %v24_v11 = vld [vmem:[%s1892_s0 + $0x18] sm:$0xff] }
   0x4   :  { %939 = vmatprep.subr.bf16.mxu0 %v1104_v0  ;;  %1020 = vmatprep.subr.bf16.mxu1 %v1104_v0  ;;  %v68_v9 = vpack.c.bf16 %v42_v7, %v41_v6  ;;  %v43_v12 = vld [vmem:[%s1892_s0 + $0xb0] sm:$0xff]  ;;  %v44_v13 = vld [vmem:[%s1892_s0 + $0xb8] sm:$0xff]  ;;  %v59_v14 = vpack.c.bf16 %v24_v11, %v23_v10  ;;  %v25_v16 = vld [vmem:[%s1892_s0 + $0x20] sm:$0xff] }
   0x5   :  { %v69_v15 = vpack.c.bf16 %v44_v13, %v43_v12  ;;  %v26_v17 = vld [vmem:[%s1892_s0 + $0x28] sm:$0xff]  ;;  %v45_v18 = vld [vmem:[%s1892_s0 + $0xc0] sm:$0xff]  ;;  %v27_v22 = vld [vmem:[%s1892_s0 + $0x30] sm:$0xff] }
   0x6   :  { %v46_v19 = vld [vmem:[%s1892_s0 + $0xc8] sm:$0xff]  ;;  %v60_v20 = vpack.c.bf16 %v26_v17, %v25_v16  ;;  %v28_v23 = vld [vmem:[%s1892_s0 + $0x38] sm:$0xff]  ;;  %v47_v24 = vld [vmem:[%s1892_s0 + $0xd0] sm:$0xff] }
   0x7   :  { %940 = vmatpush3.bf16.msra.mxu0 %v1028_v2  ;;  %1023 = vmatpush3.bf16.msra.mxu1 %v1028_v2  ;;  %v70_v21 = vpack.c.bf16 %v46_v19, %v45_v18  ;;  %v48_v25 = vld [vmem:[%s1892_s0 + $0xd8] sm:$0xff]  ;;  %v61_v26 = vpack.c.bf16 %v28_v23, %v27_v22  ;;  %v29_v28 = vld [vmem:[%s1892_s0 + $0x40] sm:$0xff]  ;;  %v30_v29 = vld [vmem:[%s1892_s0 + $0x48] sm:$0xff] }
   0x8   :  { %941 = vmatprep.subr.bf16.mxu0 %v1104_v0  ;;  %1021 = vmatprep.subr.bf16.mxu1 %v1104_v0  ;;  %v71_v27 = vpack.c.bf16 %v48_v25, %v47_v24  ;;  %v49_v30 = vld [vmem:[%s1892_s0 + $0xe0] sm:$0xff]  ;;  %v50_v31 = vld [vmem:[%s1892_s0 + $0xe8] sm:$0xff]  ;;  %v62_v32 = vpack.c.bf16 %v30_v29, %v29_v28  ;;  %v31_v34 = vld [vmem:[%s1892_s0 + $0x50] sm:$0xff] }
   0x9   :  { %v72_v33 = vpack.c.bf16 %v50_v31, %v49_v30  ;;  %v32_v35 = vld [vmem:[%s1892_s0 + $0x58] sm:$0xff]  ;;  %v51_v36 = vld [vmem:[%s1892_s0 + $0xf0] sm:$0xff]  ;;  %v33_v40 = vld [vmem:[%s1892_s0 + $0x60] sm:$0xff] }
   0xa   :  { %v52_v37 = vld [vmem:[%s1892_s0 + $0xf8] sm:$0xff]  ;;  %v63_v38 = vpack.c.bf16 %v32_v35, %v31_v34  ;;  %v34_v41 = vld [vmem:[%s1892_s0 + $0x68] sm:$0xff]  ;;  %v53_v42 = vld [vmem:[%s1892_s0 + $0x100] sm:$0xff] }
   0xb   :  { %942 = vmatpush3.bf16.msra.mxu0 %v1029_v3  ;;  %1024 = vmatpush3.bf16.msra.mxu1 %v1029_v3  ;;  %v73_v39 = vpack.c.bf16 %v52_v37, %v51_v36  ;;  %v54_v43 = vld [vmem:[%s1892_s0 + $0x108] sm:$0xff]  ;;  %v64_v44 = vpack.c.bf16 %v34_v41, %v33_v40  ;;  %v35_v46 = vld [vmem:[%s1892_s0 + $0x70] sm:$0xff]  ;;  %v36_v47 = vld [vmem:[%s1892_s0 + $0x78] sm:$0xff] }
   0xc   :  { %v74_v45 = vpack.c.bf16 %v54_v43, %v53_v42  ;;  %v55_v48 = vld [vmem:[%s1892_s0 + $0x110] sm:$0xff]  ;;  %v56_v49 = vld [vmem:[%s1892_s0 + $0x118] sm:$0xff]  ;;  %v65_v50 = vpack.c.bf16 %v36_v47, %v35_v46  ;;  %v37_v52 = vld [vmem:[%s1892_s0 + $0x80] sm:$0xff] }
   0xd   :  { %v75_v51 = vpack.c.bf16 %v56_v49, %v55_v48  ;;  %v38_v53 = vld [vmem:[%s1892_s0 + $0x88] sm:$0xff]  ;;  %v57_v54 = vld [vmem:[%s1892_s0 + $0x120] sm:$0x3f]  ;;  %v39_v57 = vld [vmem:[%s1892_s0 + $0x90] sm:$0xff] }
   0xe   :  { %944 = vmatmul.mubr.msk.bf16.vlgmr.msra.gmra.mrb[0].mxu0 %vm108_vm1, %v58_v8  ;;  %984 = vmatmul.mubr.msk.bf16.vlgmr.msra.gmra.mrb[0].mxu1 %vm108_vm1, %v68_v9  ;;  %v66_v55 = vpack.c.bf16 %v38_v53, %v37_v52  ;;  %v76_v56 = vpack.c.bf16 %v57_v54, %v57_v54  ;;  %v40_v58 = vld [vmem:[%s1892_s0 + $0x98] sm:$0xff]  ;;  %v1322_v60 = vld [vmem:[%s1893_s2] ss:$0 sm:$0xff] }
   0xf   :  { %947 = vmatprep.mubr.msk.bf16.mxu0 %vm1105_vm0, %v1104_v0  ;;  %987 = vmatprep.mubr.msk.bf16.mxu1 %vm1105_vm0, %v1104_v0  ;;  %v67_v59 = vpack.c.bf16 %v40_v58, %v39_v57 }
  0x16   :  { %948 = vmatmul.mubr.msk.bf16.gmra.mrb[4].mxu0 %vm108_vm1, %v59_v14  ;;  %988 = vmatmul.mubr.msk.bf16.gmra.mrb[4].mxu1 %vm108_vm1, %v69_v15 }
  0x17   :  { %951 = vmatprep.mubr.msk.bf16.mxu0 %vm1105_vm0, %v1104_v0  ;;  %991 = vmatprep.mubr.msk.bf16.mxu1 %vm1105_vm0, %v1104_v0 }
  0x1e   :  { %952 = vmatmul.mubr.msk.bf16.gmra.mrb[8].mxu0 %vm108_vm1, %v60_v20  ;;  %992 = vmatmul.mubr.msk.bf16.gmra.mrb[8].mxu1 %vm108_vm1, %v70_v21 }
  0x1f   :  { %955 = vmatprep.mubr.msk.bf16.mxu0 %vm1105_vm0, %v1104_v0  ;;  %995 = vmatprep.mubr.msk.bf16.mxu1 %vm1105_vm0, %v1104_v0 }
  0x26   :  { %956 = vmatmul.mubr.msk.bf16.gmra.mrb[12].mxu0 %vm108_vm1, %v61_v26  ;;  %996 = vmatmul.mubr.msk.bf16.gmra.mrb[12].mxu1 %vm108_vm1, %v71_v27 }
  0x27   :  { %959 = vmatprep.mubr.msk.bf16.mxu0 %vm1105_vm0, %v1104_v0  ;;  %999 = vmatprep.mubr.msk.bf16.mxu1 %vm1105_vm0, %v1104_v0 }
  0x2e   :  { %960 = vmatmul.mubr.msk.bf16.gmra.mrb[16].mxu0 %vm108_vm1, %v62_v32  ;;  %1000 = vmatmul.mubr.msk.bf16.gmra.mrb[16].mxu1 %vm108_vm1, %v72_v33 }
  0x2f   :  { %963 = vmatprep.mubr.msk.bf16.mxu0 %vm1105_vm0, %v1104_v0  ;;  %1003 = vmatprep.mubr.msk.bf16.mxu1 %vm1105_vm0, %v1104_v0 }
  0x36   :  { %964 = vmatmul.mubr.msk.bf16.gmra.mrb[20].mxu0 %vm108_vm1, %v63_v38  ;;  %1004 = vmatmul.mubr.msk.bf16.gmra.mrb[20].mxu1 %vm108_vm1, %v73_v39 }
  0x37   :  { %967 = vmatprep.mubr.msk.bf16.mxu0 %vm1105_vm0, %v1104_v0  ;;  %1007 = vmatprep.mubr.msk.bf16.mxu1 %vm1105_vm0, %v1104_v0 }
  0x3e   :  { %968 = vmatmul.mubr.msk.bf16.gmra.mrb[24].mxu0 %vm108_vm1, %v64_v44  ;;  %1008 = vmatmul.mubr.msk.bf16.gmra.mrb[24].mxu1 %vm108_vm1, %v74_v45 }
  0x3f   :  { %971 = vmatprep.mubr.msk.bf16.mxu0 %vm1105_vm0, %v1104_v0  ;;  %1011 = vmatprep.mubr.msk.bf16.mxu1 %vm1105_vm0, %v1104_v0 }
  0x46   :  { %972 = vmatmul.mubr.msk.bf16.gmra.mrb[28].mxu0 %vm108_vm1, %v65_v50  ;;  %1012 = vmatmul.mubr.msk.bf16.gmra.mrb[28].mxu1 %vm108_vm1, %v75_v51 }
  0x47   :  { %975 = vmatprep.mubr.msk.bf16.mxu0 %vm1105_vm0, %v1104_v0  ;;  %1015 = vmatprep.mubr.msk.bf16.mxu1 %vm1105_vm0, %v1104_v0 }
  0x4e   :  { %976 = vmatmul.mubr.msk.bf16.gmra.mrb[32].mxu0 %vm108_vm1, %v66_v55  ;;  %1016 = vmatmul.mubr.msk.bf16.gmra.mrb[32].mxu1 %vm108_vm1, %v76_v56 }
  0x4f   :  { %979 = vmatprep.mubr.msk.bf16.mxu0 %vm1105_vm0, %v1104_v0 }
  0x56   :  { %980 = vmatmul.mubr.msk.bf16.gmra.mrb[36].mxu0 %vm108_vm1, %v67_v59 }
  0xe1   :  { %v200_v61 = vpop.f32.mrb[0].mxu0  ;;  %v280_v62 = vpop.f32.mrb[0].mxu1 }
  0xe2   :  { %v1325_v63 = vadd.f32 %v1322_v60, %v200_v61  ;;  %v1328_v0 = vadd.f32 %v1322_v60, %v280_v62  ;;  %v945_v1 = vpop.f32.mrb[1].mxu0  ;;  %v985_v2 = vpop.f32.mrb[1].mxu1 }
  0xe3   :  { %v203_v3 = vpop.f32.mrb[2].mxu0  ;;  %v283_v4 = vpop.f32.mrb[2].mxu1 }
  0xe4   :  { %390 = vadd.xlane.f32.xlu1 %v1328_v0  ;;  %350 = vadd.xlane.f32.xlu0 %v1325_v63  ;;  %v946_v5 = vpop.f32.mrb[3].mxu0  ;;  %v1333_v6 = vadd.f32 %v1322_v60, %v283_v4  ;;  %v986_v7 = vpop.f32.mrb[3].mxu1  ;;  %v1336_v8 = vadd.f32 %v1322_v60, %v203_v3 }
  0xe8   :  { %392 = vadd.xlane.f32.xlu0 %v1333_v6  ;;  %352 = vadd.xlane.f32.xlu1 %v1336_v8 }
  0xe9   :  { %v208_v9 = vpop.f32.mrb[4].mxu0  ;;  %v288_v10 = vpop.f32.mrb[4].mxu1 }
  0xea   :  { %v1341_v11 = vadd.f32 %v1322_v60, %v208_v9  ;;  %v949_v12 = vpop.f32.mrb[5].mxu0  ;;  %v989_v13 = vpop.f32.mrb[5].mxu1  ;;  %v1348_v18 = vadd.f32 %v1322_v60, %v288_v10 }
  0xeb   :  { %v211_v14 = vpop.f32.mrb[6].mxu0  ;;  %v291_v15 = vpop.f32.mrb[6].mxu1 }
  0xec   :  { %v1344_v16 = vadd.f32 %v1322_v60, %v211_v14  ;;  %354 = vadd.xlane.f32.xlu1 %v1341_v11  ;;  %v950_v17 = vpop.f32.mrb[7].mxu0  ;;  %v990_v19 = vpop.f32.mrb[7].mxu1  ;;  %v1352_v20 = vadd.f32 %v1322_v60, %v291_v15 }
  0xee   :  { %356 = vadd.xlane.f32.xlu0 %v1344_v16 }
  0xf0   :  { %394 = vadd.xlane.f32.xlu1 %v1348_v18 }
  0xf1   :  { %v216_v21 = vpop.f32.mrb[8].mxu0  ;;  %v296_v22 = vpop.f32.mrb[8].mxu1 }
  0xf2   :  { %v1356_v23 = vadd.f32 %v1322_v60, %v216_v21  ;;  %396 = vadd.xlane.f32.xlu0 %v1352_v20  ;;  %v953_v24 = vpop.f32.mrb[9].mxu0  ;;  %v993_v25 = vpop.f32.mrb[9].mxu1  ;;  %v1364_v30 = vadd.f32 %v1322_v60, %v296_v22 }
  0xf3   :  { %v219_v26 = vpop.f32.mrb[10].mxu0  ;;  %v299_v27 = vpop.f32.mrb[10].mxu1 }
  0xf4   :  { %v1360_v28 = vadd.f32 %v1322_v60, %v219_v26  ;;  %358 = vadd.xlane.f32.xlu1 %v1356_v23  ;;  %v954_v29 = vpop.f32.mrb[11].mxu0  ;;  %v994_v31 = vpop.f32.mrb[11].mxu1  ;;  %v1368_v32 = vadd.f32 %v1322_v60, %v299_v27 }
  0xf6   :  { %360 = vadd.xlane.f32.xlu0 %v1360_v28 }
  0xf8   :  { %398 = vadd.xlane.f32.xlu1 %v1364_v30 }
  0xf9   :  { %v224_v33 = vpop.f32.mrb[12].mxu0  ;;  %v304_v34 = vpop.f32.mrb[12].mxu1 }
  0xfa   :  { %v1372_v35 = vadd.f32 %v1322_v60, %v224_v33  ;;  %400 = vadd.xlane.f32.xlu0 %v1368_v32  ;;  %v957_v36 = vpop.f32.mrb[13].mxu0  ;;  %v997_v37 = vpop.f32.mrb[13].mxu1  ;;  %v1380_v42 = vadd.f32 %v1322_v60, %v304_v34 }
  0xfb   :  { %v227_v38 = vpop.f32.mrb[14].mxu0  ;;  %v307_v39 = vpop.f32.mrb[14].mxu1 }
  0xfc   :  { %v1376_v40 = vadd.f32 %v1322_v60, %v227_v38  ;;  %362 = vadd.xlane.f32.xlu1 %v1372_v35  ;;  %v958_v41 = vpop.f32.mrb[15].mxu0  ;;  %v998_v43 = vpop.f32.mrb[15].mxu1  ;;  %v1384_v44 = vadd.f32 %v1322_v60, %v307_v39 }
  0xfe   :  { %364 = vadd.xlane.f32.xlu0 %v1376_v40 }
 0x100   :  { %402 = vadd.xlane.f32.xlu1 %v1380_v42 }
 0x101   :  { %v232_v45 = vpop.f32.mrb[16].mxu0  ;;  %v312_v46 = vpop.f32.mrb[16].mxu1 }
 0x102   :  { %v1388_v47 = vadd.f32 %v1322_v60, %v232_v45  ;;  %404 = vadd.xlane.f32.xlu0 %v1384_v44  ;;  %v961_v48 = vpop.f32.mrb[17].mxu0  ;;  %v1001_v49 = vpop.f32.mrb[17].mxu1  ;;  %v1396_v54 = vadd.f32 %v1322_v60, %v312_v46 }
 0x103   :  { %v235_v50 = vpop.f32.mrb[18].mxu0  ;;  %v315_v51 = vpop.f32.mrb[18].mxu1 }
 0x104   :  { %v1392_v52 = vadd.f32 %v1322_v60, %v235_v50  ;;  %366 = vadd.xlane.f32.xlu1 %v1388_v47  ;;  %v962_v53 = vpop.f32.mrb[19].mxu0  ;;  %v1002_v55 = vpop.f32.mrb[19].mxu1  ;;  %v1400_v56 = vadd.f32 %v1322_v60, %v315_v51 }
 0x106   :  { %368 = vadd.xlane.f32.xlu0 %v1392_v52 }
 0x108   :  { %406 = vadd.xlane.f32.xlu1 %v1396_v54 }
 0x109   :  { %v240_v57 = vpop.f32.mrb[20].mxu0  ;;  %v320_v58 = vpop.f32.mrb[20].mxu1 }
 0x10a   :  { %v1404_v59 = vadd.f32 %v1322_v60, %v240_v57  ;;  %408 = vadd.xlane.f32.xlu0 %v1400_v56  ;;  %v965_v61 = vpop.f32.mrb[21].mxu0  ;;  %v1005_v62 = vpop.f32.mrb[21].mxu1  ;;  %v1412_v5 = vadd.f32 %v1322_v60, %v320_v58 }
 0x10b   :  { %v243_v1 = vpop.f32.mrb[22].mxu0  ;;  %v323_v2 = vpop.f32.mrb[22].mxu1 }
 0x10c   :  { %v1408_v3 = vadd.f32 %v1322_v60, %v243_v1  ;;  %370 = vadd.xlane.f32.xlu1 %v1404_v59  ;;  %v966_v4 = vpop.f32.mrb[23].mxu0  ;;  %v1006_v7 = vpop.f32.mrb[23].mxu1  ;;  %v1416_v9 = vadd.f32 %v1322_v60, %v323_v2 }
 0x10e   :  { %372 = vadd.xlane.f32.xlu0 %v1408_v3 }
 0x110   :  { %410 = vadd.xlane.f32.xlu1 %v1412_v5 }
 0x111   :  { %v248_v10 = vpop.f32.mrb[24].mxu0  ;;  %v328_v12 = vpop.f32.mrb[24].mxu1 }
 0x112   :  { %v1420_v13 = vadd.f32 %v1322_v60, %v248_v10  ;;  %412 = vadd.xlane.f32.xlu0 %v1416_v9  ;;  %v969_v14 = vpop.f32.mrb[25].mxu0  ;;  %v1009_v15 = vpop.f32.mrb[25].mxu1  ;;  %v1428_v24 = vadd.f32 %v1322_v60, %v328_v12 }
 0x113   :  { %v251_v17 = vpop.f32.mrb[26].mxu0  ;;  %v331_v19 = vpop.f32.mrb[26].mxu1 }
 0x114   :  { %v1424_v21 = vadd.f32 %v1322_v60, %v251_v17  ;;  %374 = vadd.xlane.f32.xlu1 %v1420_v13  ;;  %v970_v22 = vpop.f32.mrb[27].mxu0  ;;  %v1010_v25 = vpop.f32.mrb[27].mxu1  ;;  %v1432_v26 = vadd.f32 %v1322_v60, %v331_v19 }
 0x116   :  { %376 = vadd.xlane.f32.xlu0 %v1424_v21 }
 0x118   :  { %414 = vadd.xlane.f32.xlu1 %v1428_v24 }
 0x119   :  { %v256_v27 = vpop.f32.mrb[28].mxu0  ;;  %v336_v29 = vpop.f32.mrb[28].mxu1 }
 0x11a   :  { %v1436_v31 = vadd.f32 %v1322_v60, %v256_v27  ;;  %416 = vadd.xlane.f32.xlu0 %v1432_v26  ;;  %v973_v33 = vpop.f32.mrb[29].mxu0  ;;  %v1013_v34 = vpop.f32.mrb[29].mxu1  ;;  %v1465_v12 = vadd.f32 %v1322_v60, %v336_v29 }
 0x11b   :  { %v259_v36 = vpop.f32.mrb[30].mxu0  ;;  %v339_v37 = vpop.f32.mrb[30].mxu1 }
 0x11c   :  { %v1440_v38 = vadd.f32 %v1322_v60, %v259_v36  ;;  %378 = vadd.xlane.f32.xlu1 %v1436_v31  ;;  %v974_v39 = vpop.f32.mrb[31].mxu0  ;;  %v1014_v41 = vpop.f32.mrb[31].mxu1  ;;  %v1469_v14 = vadd.f32 %v1322_v60, %v339_v37 }
 0x11e   :  { %380 = vadd.xlane.f32.xlu0 %v1440_v38 }
 0x121   :  { %v264_v43 = vpop.f32.mrb[32].mxu0  ;;  %v344_v45 = vpop.f32.mrb[32].mxu1 }
 0x122   :  { %v1445_v46 = vadd.f32 %v1322_v60, %v264_v43  ;;  %v1448_v48 = vadd.f32 %v1322_v60, %v344_v45  ;;  %v977_v49 = vpop.f32.mrb[33].mxu0  ;;  %v1017_v50 = vpop.f32.mrb[33].mxu1 }
 0x123   :  { %v267_v51 = vpop.f32.mrb[34].mxu0  ;;  %v347_v53 = vpop.f32.mrb[34].mxu1 }
 0x124   :  { %382 = vadd.xlane.f32.xlu1 %v1445_v46  ;;  %v978_v55 = vpop.f32.mrb[35].mxu0  ;;  %v423_v57 = vsel %vm422_vm2, %v1448_v48, 0.0  ;;  %v1018_v58 = vpop.f32.mrb[35].mxu1  ;;  %v1454_v61 = vadd.f32 %v1322_v60, %v267_v51 }
 0x125   :  { %424 = vadd.xlane.f32.xlu0 %v423_v57 }
 0x129   :  { %384 = vadd.xlane.f32.xlu0 %v1454_v61  ;;  %v272_v62 = vpop.f32.mrb[36].mxu0 }
 0x12a   :  { %v1458_v1 = vadd.f32 %v1322_v60, %v272_v62  ;;  %v981_v2 = vpop.f32.mrb[37].mxu0 }
 0x12b   :  { %v275_v4 = vpop.f32.mrb[38].mxu0 }
 0x12c   :  { %v1461_v7 = vadd.f32 %v1322_v60, %v275_v4  ;;  %386 = vadd.xlane.f32.xlu1 %v1458_v1  ;;  %v982_v10 = vpop.f32.mrb[39].mxu0 }
 0x12e   :  { %388 = vadd.xlane.f32.xlu0 %v1461_v7 }
 0x130   :  { %418 = vadd.xlane.f32.xlu1 %v1465_v12 }
 0x132   :  { %420 = vadd.xlane.f32.xlu0 %v1469_v14 }
 0x171   :  { %v391_v15 = vpop.xlane.xlu1 %390  ;;  %v351_v17 = vpop.xlane.xlu0 %350 }
 0x172   :  { %v447_v19 = vmul.f32 0.0078125, %v391_v15  ;;  %v427_v22 = vmul.f32 0.0078125, %v351_v17 }
 0x174   :  { %v1474_v25 = vsub.f32 %v1325_v63, %v427_v22  ;;  %v1477_v29 = vsub.f32 %v1328_v0, %v447_v19 }
 0x175   :  { %v393_v27 = vpop.xlane.xlu0 %392  ;;  %v353_v33 = vpop.xlane.xlu1 %352 }
 0x176   :  { %v448_v34 = vmul.f32 0.0078125, %v393_v27  ;;  %v428_v36 = vmul.f32 0.0078125, %v353_v33  ;;  %v501_v60 = vmul.f32 %v1474_v25, %v1474_v25  ;;  %v521_v43 = vmul.f32 %v1477_v29, %v1477_v29 }
 0x178   :  { %v1482_v37 = vsub.f32 %v1336_v8, %v428_v36  ;;  %538 = vadd.xlane.f32.xlu1 %v501_v60  ;;  %v1485_v41 = vsub.f32 %v1333_v6, %v448_v34 }
 0x179   :  { %v355_v39 = vpop.xlane.xlu1 %354 }
 0x17a   :  { %v429_v63 = vmul.f32 0.0078125, %v355_v39  ;;  %v502_v0 = vmul.f32 %v1482_v37, %v1482_v37  ;;  %v522_v55 = vmul.f32 %v1485_v41, %v1485_v41 }
 0x17b   :  { %v357_v45 = vpop.xlane.xlu0 %356 }
 0x17c   :  { %v1492_v49 = vsub.f32 %v1341_v11, %v429_v63  ;;  %v430_v50 = vmul.f32 0.0078125, %v357_v45  ;;  %578 = vadd.xlane.f32.xlu1 %v521_v43  ;;  %540 = vadd.xlane.f32.xlu0 %v502_v0 }
 0x17d   :  { %v395_v8 = vpop.xlane.xlu1 %394 }
 0x17e   :  { %v1495_v51 = vsub.f32 %v1344_v16, %v430_v50  ;;  %v449_v6 = vmul.f32 0.0078125, %v395_v8  ;;  %v503_v53 = vmul.f32 %v1492_v49, %v1492_v49 }
 0x17f   :  { %v397_v57 = vpop.xlane.xlu0 %396 }
 0x180   :  { %v1502_v58 = vsub.f32 %v1348_v18, %v449_v6  ;;  %v450_v11 = vmul.f32 0.0078125, %v397_v57  ;;  %542 = vadd.xlane.f32.xlu1 %v503_v53  ;;  %580 = vadd.xlane.f32.xlu0 %v522_v55  ;;  %v504_v10 = vmul.f32 %v1495_v51, %v1495_v51 }
 0x181   :  { %v359_v62 = vpop.xlane.xlu1 %358 }
 0x182   :  { %v1505_v2 = vsub.f32 %v1352_v20, %v450_v11  ;;  %v431_v16 = vmul.f32 0.0078125, %v359_v62  ;;  %v523_v4 = vmul.f32 %v1502_v58, %v1502_v58 }
 0x183   :  { %v361_v15 = vpop.xlane.xlu0 %360 }
 0x184   :  { %v1512_v17 = vsub.f32 %v1356_v23, %v431_v16  ;;  %v432_v18 = vmul.f32 0.0078125, %v361_v15  ;;  %582 = vadd.xlane.f32.xlu1 %v523_v4  ;;  %544 = vadd.xlane.f32.xlu0 %v504_v10  ;;  %v524_v33 = vmul.f32 %v1505_v2, %v1505_v2 }
 0x185   :  { %v399_v19 = vpop.xlane.xlu1 %398 }
 0x186   :  { %v1515_v22 = vsub.f32 %v1360_v28, %v432_v18  ;;  %v451_v20 = vmul.f32 0.0078125, %v399_v19  ;;  %v505_v27 = vmul.f32 %v1512_v17, %v1512_v17 }
 0x187   :  { %v401_v34 = vpop.xlane.xlu0 %400 }
 0x188   :  { %v1522_v36 = vsub.f32 %v1364_v30, %v451_v20  ;;  %v452_v23 = vmul.f32 0.0078125, %v401_v34  ;;  %546 = vadd.xlane.f32.xlu1 %v505_v27  ;;  %584 = vadd.xlane.f32.xlu0 %v524_v33  ;;  %v506_v43 = vmul.f32 %v1515_v22, %v1515_v22 }
 0x189   :  { %v363_v60 = vpop.xlane.xlu1 %362 }
 0x18a   :  { %v1525_v39 = vsub.f32 %v1368_v32, %v452_v23  ;;  %v433_v28 = vmul.f32 0.0078125, %v363_v60  ;;  %v525_v63 = vmul.f32 %v1522_v36, %v1522_v36 }
 0x18b   :  { %v365_v0 = vpop.xlane.xlu0 %364 }
 0x18c   :  { %v1532_v45 = vsub.f32 %v1372_v35, %v433_v28  ;;  %v434_v30 = vmul.f32 0.0078125, %v365_v0  ;;  %586 = vadd.xlane.f32.xlu1 %v525_v63  ;;  %548 = vadd.xlane.f32.xlu0 %v506_v43  ;;  %v526_v53 = vmul.f32 %v1525_v39, %v1525_v39 }
 0x18d   :  { %v403_v50 = vpop.xlane.xlu1 %402 }
 0x18e   :  { %v1535_v8 = vsub.f32 %v1376_v40, %v434_v30  ;;  %v453_v32 = vmul.f32 0.0078125, %v403_v50  ;;  %v507_v6 = vmul.f32 %v1532_v45, %v1532_v45 }
 0x18f   :  { %v405_v55 = vpop.xlane.xlu0 %404 }
 0x190   :  { %v1542_v57 = vsub.f32 %v1380_v42, %v453_v32  ;;  %v454_v35 = vmul.f32 0.0078125, %v405_v55  ;;  %550 = vadd.xlane.f32.xlu1 %v507_v6  ;;  %588 = vadd.xlane.f32.xlu0 %v526_v53  ;;  %v508_v4 = vmul.f32 %v1535_v8, %v1535_v8 }
 0x191   :  { %v367_v11 = vpop.xlane.xlu1 %366 }
 0x192   :  { %v1545_v62 = vsub.f32 %v1384_v44, %v454_v35  ;;  %v435_v40 = vmul.f32 0.0078125, %v367_v11  ;;  %v527_v16 = vmul.f32 %v1542_v57, %v1542_v57 }
 0x193   :  { %v369_v10 = vpop.xlane.xlu0 %368 }
 0x194   :  { %v1552_v15 = vsub.f32 %v1388_v47, %v435_v40  ;;  %v436_v42 = vmul.f32 0.0078125, %v369_v10  ;;  %590 = vadd.xlane.f32.xlu1 %v527_v16  ;;  %552 = vadd.xlane.f32.xlu0 %v508_v4  ;;  %v528_v27 = vmul.f32 %v1545_v62, %v1545_v62 }
 0x195   :  { %v407_v18 = vpop.xlane.xlu1 %406 }
 0x196   :  { %v1555_v19 = vsub.f32 %v1392_v52, %v436_v42  ;;  %v455_v44 = vmul.f32 0.0078125, %v407_v18  ;;  %v509_v20 = vmul.f32 %v1552_v15, %v1552_v15 }
 0x197   :  { %v409_v33 = vpop.xlane.xlu0 %408 }
 0x198   :  { %v1562_v34 = vsub.f32 %v1396_v54, %v455_v44  ;;  %v456_v47 = vmul.f32 0.0078125, %v409_v33  ;;  %554 = vadd.xlane.f32.xlu1 %v509_v20  ;;  %592 = vadd.xlane.f32.xlu0 %v528_v27  ;;  %v510_v63 = vmul.f32 %v1555_v19, %v1555_v19 }
 0x199   :  { %v371_v23 = vpop.xlane.xlu1 %370 }
 0x19a   :  { %v1565_v60 = vsub.f32 %v1400_v56, %v456_v47  ;;  %v437_v52 = vmul.f32 0.0078125, %v371_v23  ;;  %v529_v28 = vmul.f32 %v1562_v34, %v1562_v34 }
 0x19b   :  { %v373_v43 = vpop.xlane.xlu0 %372 }
 0x19c   :  { %v1572_v0 = vsub.f32 %v1404_v59, %v437_v52  ;;  %v438_v54 = vmul.f32 0.0078125, %v373_v43  ;;  %594 = vadd.xlane.f32.xlu1 %v529_v28  ;;  %556 = vadd.xlane.f32.xlu0 %v510_v63  ;;  %v530_v6 = vmul.f32 %v1565_v60, %v1565_v60 }
 0x19d   :  { %v411_v30 = vpop.xlane.xlu1 %410 }
 0x19e   :  { %v1575_v50 = vsub.f32 %v1408_v3, %v438_v54  ;;  %v457_v56 = vmul.f32 0.0078125, %v411_v30  ;;  %v511_v32 = vmul.f32 %v1572_v0, %v1572_v0 }
 0x19f   :  { %v413_v53 = vpop.xlane.xlu0 %412 }
 0x1a0   :  { %v1582_v55 = vsub.f32 %v1412_v5, %v457_v56  ;;  %v458_v59 = vmul.f32 0.0078125, %v413_v53  ;;  %558 = vadd.xlane.f32.xlu1 %v511_v32  ;;  %596 = vadd.xlane.f32.xlu0 %v530_v6  ;;  %v512_v16 = vmul.f32 %v1575_v50, %v1575_v50 }
 0x1a1   :  { %v375_v35 = vpop.xlane.xlu1 %374 }
 0x1a2   :  { %v1585_v11 = vsub.f32 %v1416_v9, %v458_v59  ;;  %v439_v3 = vmul.f32 0.0078125, %v375_v35  ;;  %v531_v40 = vmul.f32 %v1582_v55, %v1582_v55 }
 0x1a3   :  { %v377_v4 = vpop.xlane.xlu0 %376 }
 0x1a4   :  { %v1592_v10 = vsub.f32 %v1420_v13, %v439_v3  ;;  %v440_v5 = vmul.f32 0.0078125, %v377_v4  ;;  %598 = vadd.xlane.f32.xlu1 %v531_v40  ;;  %560 = vadd.xlane.f32.xlu0 %v512_v16  ;;  %v532_v20 = vmul.f32 %v1585_v11, %v1585_v11 }
 0x1a5   :  { %v415_v42 = vpop.xlane.xlu1 %414 }
 0x1a6   :  { %v1595_v18 = vsub.f32 %v1424_v21, %v440_v5  ;;  %v459_v9 = vmul.f32 0.0078125, %v415_v42  ;;  %v513_v44 = vmul.f32 %v1592_v10, %v1592_v10 }
 0x1a7   :  { %v417_v27 = vpop.xlane.xlu0 %416 }
 0x1a8   :  { %v1602_v33 = vsub.f32 %v1428_v24, %v459_v9  ;;  %v460_v13 = vmul.f32 0.0078125, %v417_v27  ;;  %562 = vadd.xlane.f32.xlu1 %v513_v44  ;;  %600 = vadd.xlane.f32.xlu0 %v532_v20  ;;  %v514_v28 = vmul.f32 %v1595_v18, %v1595_v18 }
 0x1a9   :  { %v379_v47 = vpop.xlane.xlu1 %378 }
 0x1aa   :  { %v1605_v23 = vsub.f32 %v1432_v26, %v460_v13  ;;  %v441_v21 = vmul.f32 0.0078125, %v379_v47  ;;  %v533_v52 = vmul.f32 %v1602_v33, %v1602_v33 }
 0x1ab   :  { %v381_v63 = vpop.xlane.xlu0 %380 }
 0x1ac   :  { %v1612_v43 = vsub.f32 %v1436_v31, %v441_v21  ;;  %v442_v24 = vmul.f32 0.0078125, %v381_v63  ;;  %602 = vadd.xlane.f32.xlu1 %v533_v52  ;;  %564 = vadd.xlane.f32.xlu0 %v514_v28  ;;  %v534_v30 = vmul.f32 %v1605_v23, %v1605_v23 }
 0x1ae   :  { %v1615_v54 = vsub.f32 %v1440_v38, %v442_v24  ;;  %v515_v26 = vmul.f32 %v1612_v43, %v1612_v43 }
 0x1b0   :  { %566 = vadd.xlane.f32.xlu1 %v515_v26  ;;  %604 = vadd.xlane.f32.xlu0 %v534_v30  ;;  %v516_v32 = vmul.f32 %v1615_v54, %v1615_v54 }
 0x1b1   :  { %v383_v31 = vpop.xlane.xlu1 %382 }
 0x1b2   :  { %v425_v56 = vpop.xlane.xlu0 %424  ;;  %v443_v4 = vmul.f32 0.0078125, %v383_v31 }
 0x1b3   :  { %v463_v21 = vmul.f32 0.0078125, %v425_v56 }
 0x1b4   :  { %568 = vadd.xlane.f32.xlu0 %v516_v32  ;;  %v1637_v27 = vsub.f32 %v1445_v46, %v443_v4 }
 0x1b5   :  { %v1652_v28 = vsub.f32 %v1448_v48, %v463_v21 }
 0x1b6   :  { %v385_v6 = vpop.xlane.xlu0 %384  ;;  %v517_v46 = vmul.f32 %v1637_v27, %v1637_v27 }
 0x1b7   :  { %v444_v53 = vmul.f32 0.0078125, %v385_v6  ;;  %v537_v63 = vmul.f32 %v1652_v28, %v1652_v28 }
 0x1b9   :  { %v1624_v59 = vsub.f32 %v1454_v61, %v444_v53  ;;  %v387_v38 = vpop.xlane.xlu1 %386  ;;  %v610_v24 = vsel %vm422_vm2, %v537_v63, 0.0 }
 0x1ba   :  { %v445_v13 = vmul.f32 0.0078125, %v387_v38 }
 0x1bb   :  { %v389_v35 = vpop.xlane.xlu0 %388  ;;  %v518_v3 = vmul.f32 %v1624_v59, %v1624_v59 }
 0x1bc   :  { %v446_v40 = vmul.f32 0.0078125, %v389_v35  ;;  %v1647_v52 = vsub.f32 %v1458_v1, %v445_v13 }
 0x1bd   :  { %v419_v16 = vpop.xlane.xlu1 %418  ;;  %572 = vadd.xlane.f32.xlu0 %v518_v3 }
 0x1be   :  { %v1629_v5 = vsub.f32 %v1461_v7, %v446_v40  ;;  %v461_v42 = vmul.f32 0.0078125, %v419_v16 }
 0x1bf   :  { %v421_v9 = vpop.xlane.xlu0 %420 }
 0x1c0   :  { %v1632_v44 = vsub.f32 %v1465_v12, %v461_v42  ;;  %v462_v20 = vmul.f32 0.0078125, %v421_v9  ;;  %v520_v61 = vmul.f32 %v1629_v5, %v1629_v5 }
 0x1c2   :  { %v1640_v47 = vsub.f32 %v1469_v14, %v462_v20  ;;  %576 = vadd.xlane.f32.xlu0 %v520_v61  ;;  %v535_v7 = vmul.f32 %v1632_v44, %v1632_v44  ;;  %v519_v14 = vmul.f32 %v1647_v52, %v1647_v52 }
 0x1c4   :  { %606 = vadd.xlane.f32.xlu1 %v535_v7  ;;  %v536_v12 = vmul.f32 %v1640_v47, %v1640_v47  ;;  %v1662_v7 = vld [vmem:[%s1894_s3] ss:$0 sm:$0xff] }
 0x1c6   :  { %608 = vadd.xlane.f32.xlu0 %v536_v12 }
 0x1c8   :  { %570 = vadd.xlane.f32.xlu1 %v517_v46 }
 0x1cc   :  { %574 = vadd.xlane.f32.xlu1 %v519_v14 }
 0x1d0   :  { %611 = vadd.xlane.f32.xlu1 %v610_v24  ;;  %v1668_v24 = vld [vmem:[%s1895_s4] ss:$0 sm:$0xff] }
 0x205   :  { %v539_v1 = vpop.xlane.xlu1 %538 }
 0x206   :  { %v613_v26 = vmul.f32 0.0078125, %v539_v1 }
 0x208   :  { %v650_v30 = vadd.f32 1e-06, %v613_v26 }
 0x209   :  { %v579_v56 = vpop.xlane.xlu1 %578  ;;  %v541_v32 = vpop.xlane.xlu0 %540 }
 0x20a   :  { %1030 = vrsqrt.f32 %v650_v30  ;;  %v633_v31 = vmul.f32 0.0078125, %v579_v56  ;;  %v614_v48 = vmul.f32 0.0078125, %v541_v32 }
 0x20c   :  { %v670_v6 = vadd.f32 1e-06, %v633_v31  ;;  %v651_v53 = vadd.f32 1e-06, %v614_v48 }
 0x20d   :  { %v543_v38 = vpop.xlane.xlu1 %542  ;;  %v581_v35 = vpop.xlane.xlu0 %580 }
 0x20e   :  { %1032 = vrsqrt.f32 %v670_v6  ;;  %v615_v3 = vmul.f32 0.0078125, %v543_v38  ;;  %v634_v40 = vmul.f32 0.0078125, %v581_v35 }
 0x20f   :  { %1034 = vrsqrt.f32 %v651_v53 }
 0x210   :  { %v652_v16 = vadd.f32 1e-06, %v615_v3  ;;  %v671_v4 = vadd.f32 1e-06, %v634_v40 }
 0x211   :  { %v583_v42 = vpop.xlane.xlu1 %582  ;;  %v545_v9 = vpop.xlane.xlu0 %544 }
 0x212   :  { %1036 = vrsqrt.f32 %v652_v16  ;;  %v635_v20 = vmul.f32 0.0078125, %v583_v42  ;;  %v616_v61 = vmul.f32 0.0078125, %v545_v9 }
 0x213   :  { %1038 = vrsqrt.f32 %v671_v4 }
 0x214   :  { %v1031_v13 = vpop.eup %1030  ;;  %v672_v21 = vadd.f32 1e-06, %v635_v20  ;;  %v653_v12 = vadd.f32 1e-06, %v616_v61 }
 0x215   :  { %v724_v46 = vmul.f32 %v1031_v13, %v1474_v25  ;;  %v547_v14 = vpop.xlane.xlu1 %546  ;;  %v585_v63 = vpop.xlane.xlu0 %584 }
 0x216   :  { %1040 = vrsqrt.f32 %v672_v21  ;;  %v617_v1 = vmul.f32 0.0078125, %v547_v14  ;;  %v636_v26 = vmul.f32 0.0078125, %v585_v63 }
 0x217   :  { %v768_v30 = vmul.f32 %v1662_v7, %v724_v46  ;;  %1042 = vrsqrt.f32 %v653_v12 }
 0x218   :  { %v1033_v56 = vpop.eup %1032  ;;  %v654_v32 = vadd.f32 1e-06, %v617_v1  ;;  %v673_v31 = vadd.f32 1e-06, %v636_v26 }
 0x219   :  { %v1035_v48 = vpop.eup %1034  ;;  %v812_v6 = vadd.f32 %v1668_v24, %v768_v30  ;;  %v744_v25 = vmul.f32 %v1033_v56, %v1477_v29  ;;  %v587_v53 = vpop.xlane.xlu1 %586 }
 0x21a   :  { %v549_v38 = vpop.xlane.xlu0 %548  ;;  %v725_v35 = vmul.f32 %v1035_v48, %v1482_v37  ;;  %1044 = vrsqrt.f32 %v654_v32  ;;  %v637_v3 = vmul.f32 0.0078125, %v587_v53 }
 0x21b   :  { %v618_v40 = vmul.f32 0.0078125, %v549_v38  ;;  %849 = vst [vmem:[%s1896_s5] sm:$0xff] %v812_v6  ;;  %v788_v16 = vmul.f32 %v1662_v7, %v744_v25  ;;  %1046 = vrsqrt.f32 %v673_v31 }
 0x21c   :  { %v1037_v4 = vpop.eup %1036  ;;  %v769_v42 = vmul.f32 %v1662_v7, %v725_v35  ;;  %v674_v9 = vadd.f32 1e-06, %v637_v3 }
 0x21d   :  { %v655_v20 = vadd.f32 1e-06, %v618_v40  ;;  %v1039_v29 = vpop.eup %1038  ;;  %v832_v61 = vadd.f32 %v1668_v24, %v788_v16  ;;  %v726_v37 = vmul.f32 %v1037_v4, %v1492_v49  ;;  %v551_v13 = vpop.xlane.xlu1 %550 }
 0x21e   :  { %v589_v21 = vpop.xlane.xlu0 %588  ;;  %v813_v12 = vadd.f32 %v1668_v24, %v769_v42  ;;  %v745_v46 = vmul.f32 %v1039_v29, %v1485_v41  ;;  %1048 = vrsqrt.f32 %v674_v9  ;;  %v619_v14 = vmul.f32 0.0078125, %v551_v13 }
 0x21f   :  { %869 = vst [vmem:[%s1896_s5 + $0xa0] sm:$0xff] %v832_v61  ;;  %v770_v63 = vmul.f32 %v1662_v7, %v726_v37  ;;  %1050 = vrsqrt.f32 %v655_v20  ;;  %v638_v1 = vmul.f32 0.0078125, %v589_v21 }
 0x220   :  { %v1041_v26 = vpop.eup %1040  ;;  %850 = vst [vmem:[%s1896_s5 + $0x8] sm:$0xff] %v813_v12  ;;  %v789_v49 = vmul.f32 %v1662_v7, %v745_v46  ;;  %v656_v30 = vadd.f32 1e-06, %v619_v14 }
 0x221   :  { %v1043_v56 = vpop.eup %1042  ;;  %v814_v41 = vadd.f32 %v1668_v24, %v770_v63  ;;  %v746_v32 = vmul.f32 %v1041_v26, %v1502_v58  ;;  %v675_v31 = vadd.f32 1e-06, %v638_v1  ;;  %v591_v48 = vpop.xlane.xlu1 %590 }
 0x222   :  { %v553_v6 = vpop.xlane.xlu0 %552  ;;  %v833_v25 = vadd.f32 %v1668_v24, %v789_v49  ;;  %v727_v53 = vmul.f32 %v1043_v56, %v1495_v51  ;;  %1052 = vrsqrt.f32 %v656_v30  ;;  %v639_v38 = vmul.f32 0.0078125, %v591_v48 }
 0x223   :  { %851 = vst [vmem:[%s1896_s5 + $0x10] sm:$0xff] %v814_v41  ;;  %v790_v35 = vmul.f32 %v1662_v7, %v746_v32  ;;  %1054 = vrsqrt.f32 %v675_v31  ;;  %v620_v3 = vmul.f32 0.0078125, %v553_v6 }
 0x224   :  { %v1045_v40 = vpop.eup %1044  ;;  %870 = vst [vmem:[%s1896_s5 + $0xa8] sm:$0xff] %v833_v25  ;;  %v771_v58 = vmul.f32 %v1662_v7, %v727_v53  ;;  %v676_v16 = vadd.f32 1e-06, %v639_v38 }
 0x225   :  { %v1047_v4 = vpop.eup %1046  ;;  %v834_v51 = vadd.f32 %v1668_v24, %v790_v35  ;;  %v728_v42 = vmul.f32 %v1045_v40, %v1512_v17  ;;  %v657_v9 = vadd.f32 1e-06, %v620_v3  ;;  %v555_v20 = vpop.xlane.xlu1 %554 }
 0x226   :  { %v593_v29 = vpop.xlane.xlu0 %592  ;;  %v815_v61 = vadd.f32 %v1668_v24, %v771_v58  ;;  %v747_v37 = vmul.f32 %v1047_v4, %v1505_v2  ;;  %1056 = vrsqrt.f32 %v676_v16  ;;  %v621_v13 = vmul.f32 0.0078125, %v555_v20 }
 0x227   :  { %871 = vst [vmem:[%s1896_s5 + $0xb0] sm:$0xff] %v834_v51  ;;  %v772_v21 = vmul.f32 %v1662_v7, %v728_v42  ;;  %1058 = vrsqrt.f32 %v657_v9  ;;  %v640_v12 = vmul.f32 0.0078125, %v593_v29 }
 0x228   :  { %v1049_v46 = vpop.eup %1048  ;;  %852 = vst [vmem:[%s1896_s5 + $0x18] sm:$0xff] %v815_v61  ;;  %v791_v17 = vmul.f32 %v1662_v7, %v747_v37  ;;  %v658_v14 = vadd.f32 1e-06, %v621_v13 }
 0x229   :  { %v1051_v63 = vpop.eup %1050  ;;  %v816_v2 = vadd.f32 %v1668_v24, %v772_v21  ;;  %v748_v1 = vmul.f32 %v1049_v46, %v1522_v36  ;;  %v677_v26 = vadd.f32 1e-06, %v640_v12  ;;  %v595_v49 = vpop.xlane.xlu1 %594 }
 0x22a   :  { %v557_v30 = vpop.xlane.xlu0 %556  ;;  %v835_v56 = vadd.f32 %v1668_v24, %v791_v17  ;;  %v729_v41 = vmul.f32 %v1051_v63, %v1515_v22  ;;  %1060 = vrsqrt.f32 %v658_v14  ;;  %v641_v32 = vmul.f32 0.0078125, %v595_v49 }
 0x22b   :  { %853 = vst [vmem:[%s1896_s5 + $0x20] sm:$0xff] %v816_v2  ;;  %v792_v31 = vmul.f32 %v1662_v7, %v748_v1  ;;  %1062 = vrsqrt.f32 %v677_v26  ;;  %v622_v48 = vmul.f32 0.0078125, %v557_v30 }
 0x22c   :  { %v1053_v6 = vpop.eup %1052  ;;  %872 = vst [vmem:[%s1896_s5 + $0xb8] sm:$0xff] %v835_v56  ;;  %v773_v36 = vmul.f32 %v1662_v7, %v729_v41  ;;  %v678_v25 = vadd.f32 1e-06, %v641_v32 }
 0x22d   :  { %v1055_v53 = vpop.eup %1054  ;;  %v836_v22 = vadd.f32 %v1668_v24, %v792_v31  ;;  %v730_v38 = vmul.f32 %v1053_v6, %v1532_v45  ;;  %v659_v35 = vadd.f32 1e-06, %v622_v48  ;;  %v559_v3 = vpop.xlane.xlu1 %558 }
 0x22e   :  { %v597_v40 = vpop.xlane.xlu0 %596  ;;  %v817_v58 = vadd.f32 %v1668_v24, %v773_v36  ;;  %v749_v16 = vmul.f32 %v1055_v53, %v1525_v39  ;;  %1064 = vrsqrt.f32 %v678_v25  ;;  %v623_v4 = vmul.f32 0.0078125, %v559_v3 }
 0x22f   :  { %873 = vst [vmem:[%s1896_s5 + $0xc0] sm:$0xff] %v836_v22  ;;  %v774_v51 = vmul.f32 %v1662_v7, %v730_v38  ;;  %1066 = vrsqrt.f32 %v659_v35  ;;  %v642_v42 = vmul.f32 0.0078125, %v597_v40 }
 0x230   :  { %v1057_v9 = vpop.eup %1056  ;;  %854 = vst [vmem:[%s1896_s5 + $0x28] sm:$0xff] %v817_v58  ;;  %v793_v45 = vmul.f32 %v1662_v7, %v749_v16  ;;  %v660_v20 = vadd.f32 1e-06, %v623_v4 }
 0x231   :  { %v1059_v29 = vpop.eup %1058  ;;  %v818_v39 = vadd.f32 %v1668_v24, %v774_v51  ;;  %v750_v61 = vmul.f32 %v1057_v9, %v1542_v57  ;;  %v679_v37 = vadd.f32 1e-06, %v642_v42  ;;  %v599_v13 = vpop.xlane.xlu1 %598 }
 0x232   :  { %v561_v21 = vpop.xlane.xlu0 %560  ;;  %v837_v12 = vadd.f32 %v1668_v24, %v793_v45  ;;  %v731_v46 = vmul.f32 %v1059_v29, %v1535_v8  ;;  %1068 = vrsqrt.f32 %v660_v20  ;;  %v643_v17 = vmul.f32 0.0078125, %v599_v13 }
 0x233   :  { %855 = vst [vmem:[%s1896_s5 + $0x30] sm:$0xff] %v818_v39  ;;  %v794_v14 = vmul.f32 %v1662_v7, %v750_v61  ;;  %1070 = vrsqrt.f32 %v679_v37  ;;  %v624_v63 = vmul.f32 0.0078125, %v561_v21 }
 0x234   :  { %v1061_v2 = vpop.eup %1060  ;;  %874 = vst [vmem:[%s1896_s5 + $0xc8] sm:$0xff] %v837_v12  ;;  %v775_v57 = vmul.f32 %v1662_v7, %v731_v46  ;;  %v680_v1 = vadd.f32 1e-06, %v643_v17 }
 0x235   :  { %v1063_v26 = vpop.eup %1062  ;;  %v838_v8 = vadd.f32 %v1668_v24, %v794_v14  ;;  %v732_v49 = vmul.f32 %v1061_v2, %v1552_v15  ;;  %v661_v30 = vadd.f32 1e-06, %v624_v63  ;;  %v563_v56 = vpop.xlane.xlu1 %562 }
 0x236   :  { %v601_v41 = vpop.xlane.xlu0 %600  ;;  %v819_v32 = vadd.f32 %v1668_v24, %v775_v57  ;;  %v751_v31 = vmul.f32 %v1063_v26, %v1545_v62  ;;  %1072 = vrsqrt.f32 %v680_v1  ;;  %v625_v48 = vmul.f32 0.0078125, %v563_v56 }
 0x237   :  { %875 = vst [vmem:[%s1896_s5 + $0xd0] sm:$0xff] %v838_v8  ;;  %v776_v6 = vmul.f32 %v1662_v7, %v732_v49  ;;  %1074 = vrsqrt.f32 %v661_v30  ;;  %v644_v36 = vmul.f32 0.0078125, %v601_v41 }
 0x238   :  { %v1065_v25 = vpop.eup %1064  ;;  %856 = vst [vmem:[%s1896_s5 + $0x38] sm:$0xff] %v819_v32  ;;  %v795_v15 = vmul.f32 %v1662_v7, %v751_v31  ;;  %v662_v53 = vadd.f32 1e-06, %v625_v48 }
 0x239   :  { %v1067_v22 = vpop.eup %1066  ;;  %v820_v62 = vadd.f32 %v1668_v24, %v776_v6  ;;  %v752_v38 = vmul.f32 %v1065_v25, %v1562_v34  ;;  %v681_v35 = vadd.f32 1e-06, %v644_v36  ;;  %v603_v3 = vpop.xlane.xlu1 %602 }
 0x23a   :  { %v565_v40 = vpop.xlane.xlu0 %564  ;;  %v839_v58 = vadd.f32 %v1668_v24, %v795_v15  ;;  %v733_v16 = vmul.f32 %v1067_v22, %v1555_v19  ;;  %1076 = vrsqrt.f32 %v662_v53  ;;  %v645_v4 = vmul.f32 0.0078125, %v603_v3 }
 0x23b   :  { %857 = vst [vmem:[%s1896_s5 + $0x40] sm:$0xff] %v820_v62  ;;  %v796_v51 = vmul.f32 %v1662_v7, %v752_v38  ;;  %1078 = vrsqrt.f32 %v681_v35  ;;  %v626_v42 = vmul.f32 0.0078125, %v565_v40 }
 0x23c   :  { %v1069_v9 = vpop.eup %1068  ;;  %876 = vst [vmem:[%s1896_s5 + $0xd8] sm:$0xff] %v839_v58  ;;  %v777_v34 = vmul.f32 %v1662_v7, %v733_v16  ;;  %v682_v45 = vadd.f32 1e-06, %v645_v4 }
 0x23d   :  { %v1071_v20 = vpop.eup %1070  ;;  %v840_v19 = vadd.f32 %v1668_v24, %v796_v51  ;;  %v734_v29 = vmul.f32 %v1069_v9, %v1572_v0  ;;  %v663_v39 = vadd.f32 1e-06, %v626_v42  ;;  %v567_v61 = vpop.xlane.xlu1 %566 }
 0x23e   :  { %v605_v37 = vpop.xlane.xlu0 %604  ;;  %v821_v13 = vadd.f32 %v1668_v24, %v777_v34  ;;  %v753_v21 = vmul.f32 %v1071_v20, %v1565_v60  ;;  %1080 = vrsqrt.f32 %v682_v45  ;;  %v627_v12 = vmul.f32 0.0078125, %v567_v61 }
 0x23f   :  { %877 = vst [vmem:[%s1896_s5 + $0xe0] sm:$0xff] %v840_v19  ;;  %v778_v46 = vmul.f32 %v1662_v7, %v734_v29  ;;  %1082 = vrsqrt.f32 %v663_v39  ;;  %v646_v17 = vmul.f32 0.0078125, %v605_v37 }
 0x240   :  { %v1073_v14 = vpop.eup %1072  ;;  %858 = vst [vmem:[%s1896_s5 + $0x48] sm:$0xff] %v821_v13  ;;  %v797_v0 = vmul.f32 %v1662_v7, %v753_v21  ;;  %v664_v63 = vadd.f32 1e-06, %v627_v12 }
 0x241   :  { %v1075_v2 = vpop.eup %1074  ;;  %v822_v60 = vadd.f32 %v1668_v24, %v778_v46  ;;  %v754_v57 = vmul.f32 %v1073_v14, %v1582_v55  ;;  %v683_v1 = vadd.f32 1e-06, %v646_v17 }
 0x242   :  { %v569_v26 = vpop.xlane.xlu0 %568  ;;  %v841_v8 = vadd.f32 %v1668_v24, %v797_v0  ;;  %v735_v49 = vmul.f32 %v1075_v2, %v1575_v50  ;;  %1084 = vrsqrt.f32 %v664_v63 }
 0x243   :  { %v628_v30 = vmul.f32 0.0078125, %v569_v26  ;;  %859 = vst [vmem:[%s1896_s5 + $0x50] sm:$0xff] %v822_v60  ;;  %v798_v56 = vmul.f32 %v1662_v7, %v754_v57  ;;  %1086 = vrsqrt.f32 %v683_v1 }
 0x244   :  { %v1077_v41 = vpop.eup %1076  ;;  %878 = vst [vmem:[%s1896_s5 + $0xe8] sm:$0xff] %v841_v8  ;;  %v779_v55 = vmul.f32 %v1662_v7, %v735_v49 }
 0x245   :  { %v665_v32 = vadd.f32 1e-06, %v628_v30  ;;  %v1079_v31 = vpop.eup %1078  ;;  %v842_v50 = vadd.f32 %v1668_v24, %v798_v56  ;;  %v736_v48 = vmul.f32 %v1077_v41, %v1592_v10 }
 0x246   :  { %v823_v6 = vadd.f32 %v1668_v24, %v779_v55  ;;  %v755_v36 = vmul.f32 %v1079_v31, %v1585_v11 }
 0x247   :  { %1088 = vrsqrt.f32 %v665_v32  ;;  %879 = vst [vmem:[%s1896_s5 + $0xf0] sm:$0xff] %v842_v50  ;;  %v780_v25 = vmul.f32 %v1662_v7, %v736_v48 }
 0x248   :  { %v1081_v15 = vpop.eup %1080  ;;  %860 = vst [vmem:[%s1896_s5 + $0x58] sm:$0xff] %v823_v6  ;;  %v799_v53 = vmul.f32 %v1662_v7, %v755_v36 }
 0x249   :  { %v1083_v22 = vpop.eup %1082  ;;  %v824_v10 = vadd.f32 %v1668_v24, %v780_v25  ;;  %v756_v62 = vmul.f32 %v1081_v15, %v1602_v33 }
 0x24a   :  { %v843_v11 = vadd.f32 %v1668_v24, %v799_v53  ;;  %v737_v38 = vmul.f32 %v1083_v22, %v1595_v18  ;;  %v573_v35 = vpop.xlane.xlu0 %572 }
 0x24b   :  { %861 = vst [vmem:[%s1896_s5 + $0x60] sm:$0xff] %v824_v10  ;;  %v800_v3 = vmul.f32 %v1662_v7, %v756_v62  ;;  %v630_v40 = vmul.f32 0.0078125, %v573_v35 }
 0x24c   :  { %v1085_v58 = vpop.eup %1084  ;;  %880 = vst [vmem:[%s1896_s5 + $0xf8] sm:$0xff] %v843_v11  ;;  %v781_v16 = vmul.f32 %v1662_v7, %v737_v38 }
 0x24d   :  { %v1087_v33 = vpop.eup %1086  ;;  %v844_v4 = vadd.f32 %v1668_v24, %v800_v3  ;;  %v738_v18 = vmul.f32 %v1085_v58, %v1612_v43  ;;  %v667_v51 = vadd.f32 1e-06, %v630_v40 }
 0x24e   :  { %v825_v42 = vadd.f32 %v1668_v24, %v781_v16  ;;  %v757_v9 = vmul.f32 %v1087_v33, %v1605_v23 }
 0x24f   :  { %881 = vst [vmem:[%s1896_s5 + $0x100] sm:$0xff] %v844_v4  ;;  %v782_v34 = vmul.f32 %v1662_v7, %v738_v18  ;;  %1090 = vrsqrt.f32 %v667_v51  ;;  %v577_v45 = vpop.xlane.xlu0 %576 }
 0x250   :  { %862 = vst [vmem:[%s1896_s5 + $0x68] sm:$0xff] %v825_v42  ;;  %v801_v43 = vmul.f32 %v1662_v7, %v757_v9  ;;  %v632_v19 = vmul.f32 0.0078125, %v577_v45 }
 0x251   :  { %v1089_v20 = vpop.eup %1088  ;;  %v826_v29 = vadd.f32 %v1668_v24, %v782_v34  ;;  %v607_v39 = vpop.xlane.xlu1 %606 }
 0x252   :  { %v739_v23 = vmul.f32 %v1089_v20, %v1615_v54  ;;  %v845_v61 = vadd.f32 %v1668_v24, %v801_v43  ;;  %v669_v37 = vadd.f32 1e-06, %v632_v19  ;;  %v647_v13 = vmul.f32 0.0078125, %v607_v39 }
 0x253   :  { %863 = vst [vmem:[%s1896_s5 + $0x70] sm:$0xff] %v826_v29  ;;  %v609_v12 = vpop.xlane.xlu0 %608 }
 0x254   :  { %v783_v21 = vmul.f32 %v1662_v7, %v739_v23  ;;  %882 = vst [vmem:[%s1896_s5 + $0x108] sm:$0xff] %v845_v61  ;;  %1092 = vrsqrt.f32 %v669_v37  ;;  %v684_v46 = vadd.f32 1e-06, %v647_v13  ;;  %v648_v17 = vmul.f32 0.0078125, %v609_v12 }
 0x255   :  { %v571_v14 = vpop.xlane.xlu1 %570 }
 0x256   :  { %v827_v54 = vadd.f32 %v1668_v24, %v783_v21  ;;  %1094 = vrsqrt.f32 %v684_v46  ;;  %v685_v0 = vadd.f32 1e-06, %v648_v17  ;;  %v629_v63 = vmul.f32 0.0078125, %v571_v14 }
 0x258   :  { %864 = vst [vmem:[%s1896_s5 + $0x78] sm:$0xff] %v827_v54  ;;  %1096 = vrsqrt.f32 %v685_v0  ;;  %v666_v2 = vadd.f32 1e-06, %v629_v63 }
 0x259   :  { %v1091_v60 = vpop.eup %1090  ;;  %v575_v57 = vpop.xlane.xlu1 %574 }
 0x25a   :  { %v741_v1 = vmul.f32 %v1091_v60, %v1624_v59  ;;  %1098 = vrsqrt.f32 %v666_v2  ;;  %v631_v26 = vmul.f32 0.0078125, %v575_v57 }
 0x25c   :  { %v785_v8 = vmul.f32 %v1662_v7, %v741_v1  ;;  %v668_v49 = vadd.f32 1e-06, %v631_v26 }
 0x25d   :  { %v612_v30 = vpop.xlane.xlu1 %611 }
 0x25e   :  { %v1093_v56 = vpop.eup %1092  ;;  %v829_v41 = vadd.f32 %v1668_v24, %v785_v8  ;;  %1100 = vrsqrt.f32 %v668_v49  ;;  %v649_v55 = vmul.f32 0.0078125, %v612_v30 }
 0x25f   :  { %v743_v32 = vmul.f32 %v1093_v56, %v1629_v5 }
 0x260   :  { %v1095_v31 = vpop.eup %1094  ;;  %866 = vst [vmem:[%s1896_s5 + $0x88] sm:$0xff] %v829_v41  ;;  %v686_v50 = vadd.f32 1e-06, %v649_v55 }
 0x261   :  { %v787_v59 = vmul.f32 %v1662_v7, %v743_v32  ;;  %v758_v48 = vmul.f32 %v1095_v31, %v1632_v44 }
 0x262   :  { %v1097_v6 = vpop.eup %1096  ;;  %1102 = vrsqrt.f32 %v686_v50 }
 0x263   :  { %v831_v36 = vadd.f32 %v1668_v24, %v787_v59  ;;  %v802_v25 = vmul.f32 %v1662_v7, %v758_v48  ;;  %v759_v15 = vmul.f32 %v1097_v6, %v1640_v47 }
 0x264   :  { %v1099_v53 = vpop.eup %1098 }
 0x265   :  { %868 = vst [vmem:[%s1896_s5 + $0x98] sm:$0xff] %v831_v36  ;;  %v846_v5 = vadd.f32 %v1668_v24, %v802_v25  ;;  %v803_v22 = vmul.f32 %v1662_v7, %v759_v15  ;;  %v740_v10 = vmul.f32 %v1099_v53, %v1637_v27 }
 0x267   :  { %883 = vst [vmem:[%s1896_s5 + $0x110] sm:$0xff] %v846_v5  ;;  %v847_v44 = vadd.f32 %v1668_v24, %v803_v22  ;;  %v784_v62 = vmul.f32 %v1662_v7, %v740_v10 }
 0x268   :  { %v1101_v47 = vpop.eup %1100 }
 0x269   :  { %884 = vst [vmem:[%s1896_s5 + $0x118] sm:$0xff] %v847_v44  ;;  %v828_v11 = vadd.f32 %v1668_v24, %v784_v62  ;;  %v742_v38 = vmul.f32 %v1101_v47, %v1647_v52 }
 0x26b   :  { %865 = vst [vmem:[%s1896_s5 + $0x80] sm:$0xff] %v828_v11  ;;  %v786_v27 = vmul.f32 %v1662_v7, %v742_v38 }
 0x26c   :  { %v1103_v35 = vpop.eup %1102 }
 0x26d   :  { %v830_v3 = vadd.f32 %v1668_v24, %v786_v27  ;;  %v760_v40 = vmul.f32 %v1103_v35, %v1652_v28 }
 0x26f   :  { %867 = vst [vmem:[%s1896_s5 + $0x90] sm:$0xff] %v830_v3  ;;  %v804_v58 = vmul.f32 %v1662_v7, %v760_v40 }
 0x271   :  { %v848_v16 = vadd.f32 %v1668_v24, %v804_v58 }
 0x273   :  { %885 = vst [vmem:[%s1896_s5 + $0x120] sm:$0x3f] %v848_v16 }

// kernel: my_model_forward.3
= control target key start
LH: loop header
LB: loop body
LE: loop exit
PB: predicated region body
PF: predicated region fallthrough
CT: control target
= control target key end

     0   :  { %s3030_s0 = inlined_call_operand.vmem [shape: f32[6,49,128], index: 0, kind: input, shape index: {}]   ;;  %s3031_s1 = inlined_call_operand.vmem [shape: bf16[128,64], index: 1, kind: input, shape index: {}]   ;;  %s3032_s2 = inlined_call_operand.vmem [shape: bf16[128,64], index: 2, kind: input, shape index: {}]   ;;  %s3033_s3 = inlined_call_operand.vmem [shape: bf16[4,64,128], index: 3, kind: input, shape index: {}]   ;;  %s3034_s4 = inlined_call_operand.vmem [shape: bf16[4,64,128], index: 4, kind: input, shape index: {}]   ;;  %s3035_s5 = inlined_call_operand.vmem [shape: f32[4,4,128], index: 5, kind: input, shape index: {}]   ;;  %s3036_s6 = inlined_call_operand.vmem [shape: f32[4,1,128], index: 6, kind: input, shape index: {}]   ;;  %s3037_s7 = inlined_call_operand.vmem [shape: bf16[4,128,36], index: 7, kind: input, shape index: {}]   ;;  %s3038_s8 = inlined_call_operand.vmem [shape: bf16[4,4,128], index: 8, kind: input, shape index: {}]   ;;  %s3039_s9 = inlined_call_operand.vmem [shape: f32[4,1,128], index: 9, kind: input, shape index: {}]   ;;  %s3040_s10 = inlined_call_operand.vmem [shape: f32[4,16,128], index: 10, kind: input, shape index: {}]   ;;  %s3041_s11 = inlined_call_operand.vmem [shape: f32[4,1,128], index: 11, kind: input, shape index: {}]   ;;  %s3042_s12 = inlined_call_operand.vmem [shape: bf16[4,128,64], index: 12, kind: input, shape index: {}]   ;;  %s3043_s13 = inlined_call_operand.vmem [shape: bf16[64,128], index: 13, kind: input, shape index: {}]   ;;  %s3044_s14 = inlined_call_operand.vmem [shape: f32[1,128], index: 14, kind: input, shape index: {}]   ;;  %s3045_s15 = inlined_call_operand.hbm [shape: f32[2,128], index: 15, kind: output, shape index: {}]  }
   0x1   :  { %3050 = sst [smem:[#allocation7_spill]] %s3030_s0 }
   0x2   :  { %3051 = sst [smem:[#allocation8_spill]] %s3033_s3 }
   0x3   :  { %3052 = sst [smem:[#allocation9_spill]] %s3034_s4 }
   0x4   :  { %3053 = sst [smem:[#allocation10_spill]] %s3035_s5 }
   0x5   :  { %3054 = sst [smem:[#allocation11_spill]] %s3037_s7 }
   0x6   :  { %3055 = sst [smem:[#allocation12_spill]] %s3043_s13 }
   0x7   :  { %3056 = sst [smem:[#allocation13_spill]] %s3044_s14 }
   0x8   :  { %3057 = sst [smem:[#allocation14_spill]] %s3045_s15 }
   0x9   :  { %20 = vsyncpa [#allocation4], 0  ;;  %s2574_s18 = smov 0  }
   0xa LB: > { %3058 = sst [smem:[#allocation6_spill]] %s2483_s18  ;;  %s2580_s19 = sadd.s32 4294967295, %s2483_s18   ;;  %s2483_s18 = sphi %s2574_s18, %s26_s18  }
   0xb   : > { %p2091_p0 = scmp.ge.s32.totalorder %s2483_s18, 1  ;;  %p515_p1 = scmp.lt.s32.totalorder %s2483_s18, 5 }
   0xd   : > { %p516_p2 = pnand %p2091_p0, %p515_p1 }
   0xe   : > { %p595_p3 = scmp.lt.s32.totalorder (!%p516_p2), %s2580_s19, 3  ;;  %s3059_s3 = sld [smem:[#allocation8_spill]] (!%p516_p2) }
   0xf   : > { %519 = sbr.rel (%p516_p2) target bundleno = 1902 (0x76e), region = 80  ;;  %s3060_s4 = sld [smem:[#allocation9_spill]] (!%p516_p2) }
  0x10   : > { %s3061_s5 = sld [smem:[#allocation10_spill]] (!%p516_p2)  ;;  %s3062_s7 = sld [smem:[#allocation11_spill]] (!%p516_p2) }
  0x11   : > { %p2104_p4 = scmp.ne.s32.totalorder (!%p516_p2), %s2580_s19, 0 }
  0x16   : > { %s2586_s20 = scalar_select %p595_p3, %s2580_s19, 3 }
  0x17   : > { %v2367_v0 = vld [vmem:[%s3032_s2] sm:$0xff] (!%p2104_p4)   ;;  %v2485_v1 = vmov (!%p2104_p4), 0.0   ;;  %v2369_v3 = vld [vmem:[%s3032_s2 + $0x8] sm:$0xff] (!%p2104_p4)   ;;  %vm2486_vm0 = vmmov (!%p2104_p4), 0   ;;  %v2371_v5 = vld [vmem:[%s3032_s2 + $0x10] sm:$0xff] (!%p2104_p4)   ;;  %s3063_s18 = sld [smem:[#allocation7_spill]] (!%p2104_p4) }
  0x18   : > { %s2163_s21 = sshll.u32 %s2586_s20, 5  ;;  %s2096_s22 = sshll.u32 %s2586_s20, 2  ;;  %2221 = vmatprep.subr.bf16.mxu1 (!%p2104_p4), %v2485_v1  ;;  %2241 = vmatprep.subr.bf16.mxu0 (!%p2104_p4), %v2485_v1  ;;  %v2368_v2 = vld [vmem:[%s3031_s1] sm:$0xff] (!%p2104_p4)   ;;  %v2370_v4 = vld [vmem:[%s3031_s1 + $0x8] sm:$0xff] (!%p2104_p4)   ;;  %v2372_v6 = vld [vmem:[%s3031_s1 + $0x10] sm:$0xff] (!%p2104_p4)   ;;  %vm689_vm1 = vcmask (!%p2104_p4), 1040384  }
  0x19   : > { %s2593_s25 = scalar_lea.vmem %s3059_s3, %s2163_s21  ;;  %s2598_s28 = scalar_lea.vmem %s3060_s4, %s2163_s21  ;;  %2222 = vmatpush3.bf16.msra.mxu1 (!%p2104_p4), %v2367_v0  ;;  %2237 = vmatprep.mubr.msk.bf16.mxu1 (!%p2104_p4), %vm2486_vm0, %v2485_v1  ;;  %v2373_v7 = vld [vmem:[%s3032_s2 + $0x18] sm:$0xff] (!%p2104_p4)   ;;  %v2375_v9 = vld [vmem:[%s3032_s2 + $0x20] sm:$0xff] (!%p2104_p4)   ;;  %v2377_v14 = vld [vmem:[%s3032_s2 + $0x28] sm:$0xff] (!%p2104_p4)   ;;  %vm816_vm2 = vcmask (!%p2104_p4), 1041409   ;;  %vm818_vm3 = vcmask (!%p2104_p4), 1042434   ;;  %vm820_vm4 = vcmask (!%p2104_p4), 1043459  }
  0x1a   : > { %s2603_s16 = scalar_lea.vmem %s3061_s5, %s2096_s22  ;;  %s2165_s14 = sshll.u32 %s2586_s20, 6  ;;  %2242 = vmatpush3.bf16.msra.mxu0 (!%p2104_p4), %v2368_v2  ;;  %2223 = vmatprep.subr.bf16.mxu1 (!%p2104_p4), %v2485_v1  ;;  %v2374_v8 = vld [vmem:[%s3031_s1 + $0x18] sm:$0xff] (!%p2104_p4)   ;;  %v2376_v10 = vld [vmem:[%s3031_s1 + $0x20] sm:$0xff] (!%p2104_p4)   ;;  %v2378_v19 = vld [vmem:[%s3031_s1 + $0x28] sm:$0xff] (!%p2104_p4)   ;;  %vm1009_vm5 = vcmask (!%p2104_p4), 519168  }
  0x1b   : > { %s2099_s13 = sshll.u32 %s2586_s20, 1  ;;  %s2614_s24 = scalar_lea.vmem %s3062_s7, %s2165_s14  ;;  %2243 = vmatprep.subr.bf16.mxu0 (!%p2104_p4), %v2485_v1  ;;  %2257 = vmatprep.mubr.msk.bf16.mxu0 (!%p2104_p4), %vm2486_vm0, %v2485_v1  ;;  %v2379_v24 = vld [vmem:[%s3032_s2 + $0x30] sm:$0xff] (!%p2104_p4)   ;;  %v2381_v43 = vld [vmem:[%s3032_s2 + $0x38] sm:$0xff] (!%p2104_p4)  }
  0x1c   : > { %s2619_s21 = scalar_lea.vmem %s3038_s8, %s2099_s13  ;;  %s623_s22 = scalar_lea.vmem %s3039_s9, %s2586_s20  ;;  %v2380_v28 = vld [vmem:[%s3031_s1 + $0x30] sm:$0xff] (!%p2104_p4)   ;;  %v2382_v49 = vld [vmem:[%s3031_s1 + $0x38] sm:$0xff] (!%p2104_p4)  }
  0x1d   : > { %s2166_s30 = sshll.u32 %s2586_s20, 4  ;;  %s2638_s3 = scalar_lea.vmem %s3042_s12, %s2165_s14  ;;  %2224 = vmatpush3.bf16.msra.mxu1 (!%p2104_p4), %v2369_v3  ;;  %v649_v11 = vld [vmem:[%s3063_s18 + $0x38] sm:$0xff] (!%p2104_p4) }
  0x1e   : > { %s2629_s17 = scalar_lea.vmem %s3040_s10, %s2166_s30  ;;  %641 = sbr.rel (%p2104_p4) target bundleno = 296 (0x128), region = 84  ;;  %2244 = vmatpush3.bf16.msra.mxu0 (!%p2104_p4), %v2370_v4  ;;  %2225 = vmatprep.subr.bf16.mxu1 (!%p2104_p4), %v2485_v1 }
  0x1f   : > { %2245 = vmatprep.subr.bf16.mxu0 (!%p2104_p4), %v2485_v1  ;;  %s3064_s23 = smov (!%p2104_p4), %s3063_s18 }
  0x20   : > { %v650_v12 = vld [vmem:[%s3064_s23 + $0x40] sm:$0xff] (!%p2104_p4)  ;;  %v651_v13 = vld [vmem:[%s3064_s23 + $0x48] sm:$0xff] (!%p2104_p4)  ;;  %v652_v16 = vld [vmem:[%s3064_s23 + $0x50] sm:$0xff] (!%p2104_p4) }
  0x21   : > { %2226 = vmatpush3.bf16.msra.mxu1 (!%p2104_p4), %v2371_v5  ;;  %v698_v15 = vadd.f32 (!%p2104_p4), %v650_v12, %v649_v11  ;;  %v656_v17 = vld [vmem:[%s3064_s23 + $0x70] sm:$0xff] (!%p2104_p4)  ;;  %v657_v18 = vld [vmem:[%s3064_s23 + $0x78] sm:$0xff] (!%p2104_p4)  ;;  %v658_v21 = vld [vmem:[%s3064_s23 + $0x80] sm:$0xff] (!%p2104_p4) }
  0x22   : > { %2246 = vmatpush3.bf16.msra.mxu0 (!%p2104_p4), %v2372_v6  ;;  %2227 = vmatprep.subr.bf16.mxu1 (!%p2104_p4), %v2485_v1  ;;  %v653_v20 = vld [vmem:[%s3064_s23 + $0x58] sm:$0xff] (!%p2104_p4)  ;;  %v711_v23 = vadd.f32 (!%p2104_p4), %v657_v18, %v656_v17  ;;  %v654_v25 = vld [vmem:[%s3064_s23 + $0x60] sm:$0xff] (!%p2104_p4)  ;;  %v659_v26 = vld [vmem:[%s3064_s23 + $0x88] sm:$0xff] (!%p2104_p4) }
  0x23   : > { %2247 = vmatprep.subr.bf16.mxu0 (!%p2104_p4), %v2485_v1  ;;  %v699_v22 = vadd.f32 (!%p2104_p4), %v698_v15, %v651_v13  ;;  %v670_v27 = vld [vmem:[%s3064_s23 + $0xe0] sm:$0xff] (!%p2104_p4)  ;;  %v655_v29 = vld [vmem:[%s3064_s23 + $0x68] sm:$0x1] (!%p2104_p4)  ;;  %v672_v31 = vld [vmem:[%s3064_s23 + $0xf0] sm:$0xff] (!%p2104_p4) }
  0x24   : > { %v671_v30 = vld [vmem:[%s3064_s23 + $0xe8] sm:$0xff] (!%p2104_p4)  ;;  %v712_v33 = vadd.f32 (!%p2104_p4), %v711_v23, %v658_v21  ;;  %v660_v34 = vld [vmem:[%s3064_s23 + $0x90] sm:$0xff] (!%p2104_p4)  ;;  %v662_v35 = vld [vmem:[%s3064_s23 + $0xa0] sm:$0x1] (!%p2104_p4)  ;;  %v703_v46 = vsel (!%p2104_p4), %vm689_vm1, %v655_v29, 0.0 }
  0x25   : > { %2228 = vmatpush3.bf16.msra.mxu1 %v2373_v7  ;;  %v700_v32 = vadd.f32 %v699_v22, %v652_v16  ;;  %v673_v36 = vld [vmem:[%s3064_s23 + $0xf8] sm:$0xff]  ;;  %v737_v37 = vadd.f32 %v671_v30, %v670_v27  ;;  %v678_v39 = vld [vmem:[%s3064_s23 + $0x120] sm:$0xff]  ;;  %v679_v40 = vld [vmem:[%s3064_s23 + $0x128] sm:$0xff]  ;;  %v716_v57 = vsel %vm689_vm1, %v662_v35, 0.0 }
  0x26   : > { %2248 = vmatpush3.bf16.msra.mxu0 %v2374_v8  ;;  %2229 = vmatprep.subr.bf16.mxu1 %v2485_v1  ;;  %v677_v38 = vld [vmem:[%s3064_s23 + $0x118] sm:$0xff]  ;;  %v713_v42 = vadd.f32 %v712_v33, %v659_v26  ;;  %v674_v45 = vld [vmem:[%s3064_s23 + $0x100] sm:$0xff]  ;;  %v680_v50 = vld [vmem:[%s3064_s23 + $0x130] sm:$0xff] }
  0x27   : > { %2249 = vmatprep.subr.bf16.mxu0 %v2485_v1  ;;  %v701_v41 = vadd.f32 %v700_v32, %v653_v20  ;;  %v661_v44 = vld [vmem:[%s3064_s23 + $0x98] sm:$0xff]  ;;  %v738_v47 = vadd.f32 %v737_v37, %v672_v31  ;;  %v750_v48 = vadd.f32 %v678_v39, %v677_v38  ;;  %v642_v53 = vld [vmem:[%s3064_s23] sm:$0xff]  ;;  %v643_v54 = vld [vmem:[%s3064_s23 + $0x8] sm:$0xff] }
  0x28   : > { %v714_v52 = vadd.f32 %v713_v42, %v660_v34  ;;  %v675_v55 = vld [vmem:[%s3064_s23 + $0x108] sm:$0xff]  ;;  %v676_v56 = vld [vmem:[%s3064_s23 + $0x110] sm:$0x1]  ;;  %v684_v61 = vadd.f32 %v643_v54, %v642_v53  ;;  %v681_v62 = vld [vmem:[%s3064_s23 + $0x138] sm:$0xff] }
  0x29   : > { %2230 = vmatpush3.bf16.msra.mxu1 %v2375_v9  ;;  %v702_v51 = vadd.f32 %v701_v41, %v654_v25  ;;  %v739_v58 = vadd.f32 %v738_v47, %v673_v36  ;;  %v751_v59 = vadd.f32 %v750_v48, %v679_v40  ;;  %v644_v60 = vld [vmem:[%s3064_s23 + $0x10] sm:$0xff]  ;;  %v645_v2 = vld [vmem:[%s3064_s23 + $0x18] sm:$0xff]  ;;  %v663_v3 = vld [vmem:[%s3064_s23 + $0xa8] sm:$0xff]  ;;  %v742_v12 = vsel %vm689_vm1, %v676_v56, 0.0 }
  0x2a   : > { %2250 = vmatpush3.bf16.msra.mxu0 %v2376_v10  ;;  %2231 = vmatprep.subr.bf16.mxu1 %v2485_v1  ;;  %v715_v0 = vadd.f32 %v714_v52, %v661_v44  ;;  %v683_v4 = vld [vmem:[%s3064_s23 + $0x148] sm:$0x1]  ;;  %v664_v7 = vld [vmem:[%s3064_s23 + $0xb0] sm:$0xff]  ;;  %v665_v8 = vld [vmem:[%s3064_s23 + $0xb8] sm:$0xff]  ;;  %v685_v9 = vadd.f32 %v684_v61, %v644_v60 }
  0x2b   : > { %2251 = vmatprep.subr.bf16.mxu0 %v2485_v1  ;;  %v704_v63 = vadd.f32 %v703_v46, %v702_v51  ;;  %v740_v5 = vadd.f32 %v739_v58, %v674_v45  ;;  %v752_v6 = vadd.f32 %v751_v59, %v680_v50  ;;  %v682_v10 = vld [vmem:[%s3064_s23 + $0x140] sm:$0xff]  ;;  %v648_v17 = vld [vmem:[%s3064_s23 + $0x30] sm:$0x1]  ;;  %v755_v22 = vsel %vm689_vm1, %v683_v4, 0.0  ;;  %v647_v23 = vld [vmem:[%s3064_s23 + $0x28] sm:$0xff] }
  0x2c   : > { %v717_v11 = vadd.f32 %v716_v57, %v715_v0  ;;  %v646_v13 = vld [vmem:[%s3064_s23 + $0x20] sm:$0xff]  ;;  %v667_v27 = vld [vmem:[%s3064_s23 + $0xc8] sm:$0xff]  ;;  %v669_v31 = vld [vmem:[%s3064_s23 + $0xd8] sm:$0x1]  ;;  %v690_v32 = vsel %vm689_vm1, %v648_v17, 0.0 }
  0x2d   : > { %2232 = vmatpush3.bf16.msra.mxu1 %v2377_v14  ;;  %v724_v14 = vadd.f32 %v664_v7, %v663_v3  ;;  %v741_v15 = vadd.f32 %v740_v5, %v675_v55  ;;  %v753_v16 = vadd.f32 %v752_v6, %v681_v62  ;;  %v666_v18 = vld [vmem:[%s3064_s23 + $0xc0] sm:$0xff]  ;;  %v668_v36 = vld [vmem:[%s3064_s23 + $0xd0] sm:$0xff]  ;;  %v729_v44 = vsel %vm689_vm1, %v669_v31, 0.0 }
  0x2e   : > { %2252 = vmatpush3.bf16.msra.mxu0 %v2378_v19  ;;  %2233 = vmatprep.subr.bf16.mxu1 %v2485_v1  ;;  %v686_v19 = vadd.f32 %v685_v9, %v645_v2  ;;  %v718_v21 = vrot.slane %v717_v11, 4 }
  0x2f   : > { %2253 = vmatprep.subr.bf16.mxu0 %v2485_v1  ;;  %v743_v25 = vadd.f32 %v742_v12, %v741_v15  ;;  %v754_v26 = vadd.f32 %v753_v16, %v682_v10 }
  0x30   : > { %v719_v30 = vadd.f32 %v718_v21, %v717_v11 }
  0x31   : > { %2234 = vmatpush3.bf16.msra.mxu1 %v2379_v24  ;;  %v725_v24 = vadd.f32 %v724_v14, %v665_v8  ;;  %v744_v34 = vrot.slane %v743_v25, 4  ;;  %v756_v35 = vadd.f32 %v755_v22, %v754_v26 }
  0x32   : > { %2254 = vmatpush3.bf16.msra.mxu0 %v2380_v28  ;;  %2235 = vmatprep.subr.bf16.mxu1 %v2485_v1  ;;  %v687_v28 = vadd.f32 %v686_v19, %v646_v13  ;;  %v720_v39 = vrot.slane %v719_v30, 2 }
  0x33   : > { %2255 = vmatprep.subr.bf16.mxu0 %v2485_v1  ;;  %v705_v1 = vrot.slane %v704_v63, 4  ;;  %v726_v33 = vadd.f32 %v725_v24, %v666_v18  ;;  %v745_v41 = vadd.f32 %v744_v34, %v743_v25  ;;  %v757_v42 = vrot.slane %v756_v35, 4 }
  0x34   : > { %v688_v37 = vadd.f32 %v687_v28, %v647_v23  ;;  %v721_v46 = vadd.f32 %v720_v39, %v719_v30 }
  0x35   : > { %2236 = vmatpush3.bf16.msra.mxu1 %v2381_v43  ;;  %v706_v20 = vadd.f32 %v705_v1, %v704_v63  ;;  %v727_v40 = vadd.f32 %v726_v33, %v667_v27  ;;  %v746_v48 = vrot.slane %v745_v41, 2 }
  0x36   : > { %2256 = vmatpush3.bf16.msra.mxu0 %v2382_v49  ;;  %v691_v43 = vadd.f32 %v690_v32, %v688_v37  ;;  %v758_v49 = vadd.f32 %v757_v42, %v756_v35  ;;  %v722_v52 = vrot.slane %v721_v46, 1 }
  0x37   : > { %v707_v29 = vrot.slane %v706_v20, 2  ;;  %v728_v47 = vadd.f32 %v727_v40, %v668_v36  ;;  %v747_v54 = vadd.f32 %v746_v48, %v745_v41 }
  0x38   : > { %v692_v50 = vrot.slane %v691_v43, 4  ;;  %v759_v55 = vrot.slane %v758_v49, 2  ;;  %v723_v57 = vadd.f32 %v722_v52, %v721_v46 }
  0x39   : > { %v708_v38 = vadd.f32 %v707_v29, %v706_v20  ;;  %v730_v53 = vadd.f32 %v729_v44, %v728_v47  ;;  %v748_v60 = vrot.slane %v747_v54, 1 }
  0x3a   : > { %v693_v56 = vadd.f32 %v692_v50, %v691_v43  ;;  %v760_v61 = vadd.f32 %v759_v55, %v758_v49  ;;  %v766_v63 = vmul.f32 0.020408163, %v723_v57 }
  0x3b   : > { %v709_v45 = vrot.slane %v708_v38, 1  ;;  %v731_v59 = vrot.slane %v730_v53, 4  ;;  %v749_v3 = vadd.f32 %v748_v60, %v747_v54 }
  0x3c   : > { %v694_v62 = vrot.slane %v693_v56, 2  ;;  %v761_v4 = vrot.slane %v760_v61, 1  ;;  %v774_v6 = vpack.c.bf16 %v766_v63, %v766_v63 }
  0x3d   : > { %v710_v51 = vadd.f32 %v709_v45, %v708_v38  ;;  %v732_v2 = vadd.f32 %v731_v59, %v730_v53  ;;  %v768_v10 = vmul.f32 0.020408163, %v749_v3 }
  0x3e   : > { %v695_v5 = vadd.f32 %v694_v62, %v693_v56  ;;  %v762_v9 = vadd.f32 %v761_v4, %v760_v61  ;;  %v813_v11 = vunpack.c.l.b16 %v774_v6 }
  0x3f   : > { %v765_v58 = vmul.f32 0.020408163, %v710_v51  ;;  %v733_v8 = vrot.slane %v732_v2, 2  ;;  %v773_v14 = vpack.c.bf16 %v768_v10, %v768_v10 }
  0x40   : > { %v696_v1 = vrot.slane %v695_v5, 1  ;;  %v769_v13 = vmul.f32 0.020408163, %v762_v9 }
  0x41   : > { %v771_v0 = vpack.c.bf16 %v765_v58, %v765_v58  ;;  %v734_v12 = vadd.f32 %v733_v8, %v732_v2  ;;  %v814_v19 = vunpack.c.l.b16 %v773_v14 }
  0x42   : > { %v697_v15 = vadd.f32 %v696_v1, %v695_v5  ;;  %v775_v18 = vpack.c.bf16 %v769_v13, %v769_v13 }
  0x43   : > { %v812_v7 = vunpack.c.l.b16 %v771_v0  ;;  %v735_v17 = vrot.slane %v734_v12, 1 }
  0x44   : > { %v764_v20 = vmul.f32 0.020408163, %v697_v15  ;;  %v815_v22 = vunpack.c.l.b16 %v775_v18 }
  0x45   : > { %v817_v16 = vsel %vm816_vm2, %v813_v11, %v812_v7  ;;  %v736_v21 = vadd.f32 %v735_v17, %v734_v12 }
  0x46   : > { %v819_v23 = vsel %vm818_vm3, %v814_v19, %v817_v16  ;;  %v770_v24 = vpack.c.bf16 %v764_v20, %v764_v20 }
  0x47   : > { %v767_v25 = vmul.f32 0.020408163, %v736_v21  ;;  %v821_v26 = vsel %vm820_vm4, %v815_v22, %v819_v23 }
  0x48   : > { %v914_v27 = vunpack.c.l.b16 %v770_v24  ;;  %v822_v28 = vpack.c.b16 %v821_v26, %v821_v26 }
  0x49   : > { %v772_v29 = vpack.c.bf16 %v767_v25, %v767_v25 }
  0x4a   : > { %v916_v30 = vsel %vm816_vm2, %v812_v7, %v914_v27  ;;  %2238 = vmatmul.mubr.bf16.vlgmr.msra.gmra.mrb[0].mxu1 %v822_v28 }
  0x4b   : > { %v915_v31 = vunpack.c.l.b16 %v772_v29 }
  0x4d   : > { %v917_v32 = vsel %vm818_vm3, %v915_v31, %v916_v30 }
  0x4e   : > { %v918_v33 = vsel %vm820_vm4, %v814_v19, %v917_v32 }
  0x4f   : > { %v919_v34 = vpack.c.b16 %v918_v33, %v918_v33 }
  0x51   : > { %2258 = vmatmul.mubr.bf16.vlgmr.msra.gmra.mrb[0].mxu0 %v919_v34 }
 0x11d   : > { %v906_v35 = vpop.f32.mrb[0].mxu1 }
 0x11e   : > { %v2239_v36 = vpop.f32.mrb[1].mxu1 }
 0x11f   : > { %v909_v37 = vpop.f32.mrb[2].mxu1 }
 0x120   : > { %v2240_v38 = vpop.f32.mrb[3].mxu1 }
 0x124   : > { %v1003_v39 = vpop.f32.mrb[0].mxu0 }
 0x125   : > { %v1004_v40 = vadd.f32 %v1003_v39, %v906_v35  ;;  %v2259_v41 = vpop.f32.mrb[1].mxu0 }
 0x126   : > { %v1006_v42 = vpop.f32.mrb[2].mxu0 }
 0x127   : > { %1010 = vst.msk [vmem:[#allocation2] sm:$0xf] %vm1009_vm5, %v1004_v40  ;;  %v2260_v43 = vpop.f32.mrb[3].mxu0 }
 0x128 PF: > { %v2383_v44 = vld [vmem:[%s2593_s25] sm:$0xff]   ;;  %v2487_v45 = vmov 0.0   ;;  %v2384_v46 = vld [vmem:[%s2593_s25 + $0x8] sm:$0xff]   ;;  %vm2488_vm6 = vmmov 0   ;;  %v2385_v47 = vld [vmem:[%s2593_s25 + $0x10] sm:$0xff]   ;;  %vm1045_vm7 = vcmask 523264   ;;  %v1166_v4 = vlaneseq }
 0x129   : > { %2261 = vmatprep.subr.bf16.mxu0 %v2487_v45  ;;  %2273 = vmatprep.subr.bf16.mxu1 %v2487_v45  ;;  %v2386_v48 = vld [vmem:[%s2593_s25 + $0x18] sm:$0xff]   ;;  %v2387_v51 = vld [vmem:[%s2614_s24] sm:$0xff]   ;;  %v2388_v52 = vld [vmem:[%s2614_s24 + $0x8] sm:$0xff]   ;;  %vm1363_vm8 = vcmask 1041408   ;;  %v2489_v2 = vmov 1983009808  }
 0x12a   : > { %2262 = vmatpush3.bf16.msra.mxu0 %v2383_v44  ;;  %2269 = vmatprep.mubr.msk.bf16.mxu0 %vm2488_vm6, %v2487_v45  ;;  %v2389_v53 = vld [vmem:[%s2614_s24 + $0x10] sm:$0xff]   ;;  %v2390_v54 = vld [vmem:[%s2614_s24 + $0x18] sm:$0xff]   ;;  %v2391_v55 = vld [vmem:[%s2614_s24 + $0x20] sm:$0xff]   ;;  %v1164_v3 = vunpack.c.l.s4 %v2489_v2  ;;  %v2889_v6 = vshrl.u32 %v1166_v4, 7  ;;  %vm1189_vm9 = vcmask 1040384   ;;  %vm1359_vm10 = vcmask 31744  }
 0x12b   : > { %2263 = vmatprep.subr.bf16.mxu0 %v2487_v45  ;;  %2281 = vmatprep.mubr.msk.bf16.mxu1 %vm2488_vm6, %v2487_v45  ;;  %v2392_v56 = vld [vmem:[%s2614_s24 + $0x28] sm:$0xff]   ;;  %v2393_v57 = vld [vmem:[%s2614_s24 + $0x30] sm:$0xff]   ;;  %v2394_v58 = vld [vmem:[%s2614_s24 + $0x38] sm:$0xff]   ;;  %vm1681_vm12 = vcmask 1042432   ;;  %vm1804_vm13 = vcmask 519168   ;;  %p2151_p5 = scmp.ne.s32.totalorder %s2580_s19, 3 }
 0x12c   : > { %v2395_v59 = vld [vmem:[%s2598_s28] sm:$0xff]   ;;  %v2396_v60 = vld [vmem:[%s2598_s28 + $0x8] sm:$0xff]   ;;  %v2397_v61 = vld [vmem:[%s2598_s28 + $0x10] sm:$0xff]   ;;  %v1165_v5 = vunpack.c.0.s8 %v1164_v3  ;;  %v1202_v9 = vsub.s32 2, %v2889_v6  ;;  %v1210_v10 = vsub.s32 3, %v2889_v6  ;;  %s3067_s26 = sld [smem:[#allocation12_spill]] (!%p2151_p5) }
 0x12d   : > { %2274 = vmatpush3.bf16.msra.mxu1 %v2395_v59  ;;  %v2398_v62 = vld [vmem:[%s2598_s28 + $0x18] sm:$0xff]   ;;  %v1351_v63 = vld [vmem:[%s2619_s21] sm:$0x3]  ;;  %v1508_v59 = vsub.s32 1, %v2889_v6  ;;  %v2400_v4 = vld [vmem:[%s2638_s3 + $0x8] sm:$0xff]   ;;  %vm2492_vm14 = vmmov (!%p2151_p5), 0  }
 0x12e   : > { %2264 = vmatpush3.bf16.msra.mxu0 %v2384_v46  ;;  %v1011_v49 = vld [vmem:[#allocation2] sm:$0xf]  ;;  %2275 = vmatprep.subr.bf16.mxu1 %v2487_v45  ;;  %v1365_v0 = vsel %vm1363_vm8, %v1351_v63, 0  ;;  %v1168_v7 = vsub.s32 %v1165_v5, %v2889_v6  ;;  %v2401_v5 = vld [vmem:[%s2638_s3 + $0x10] sm:$0xff]   ;;  %vm1822_vm15 = vcmask (!%p2151_p5), 517120   ;;  %vm1861_vm0 = vcmask (!%p2151_p5), 1041409  }
 0x12f   : > { %2265 = vmatprep.subr.bf16.mxu0 %v2487_v45  ;;  %v1012_v50 = vpack.c.bf16 %v1011_v49, %v1011_v49  ;;  %v1161_v1 = vld [vmem:[%s2603_s16] sm:$0xf]  ;;  %s3065_s16 = scalar_lea.vmem %s3036_s6, %s2586_s20  ;;  %s3068_s30 = sld [smem:[#allocation13_spill]] (!%p2151_p5) }
 0x130   : > { %v1203_v17 = vrot.slane %v1161_v1, %v1202_v9  ;;  %v1211_v18 = vrot.slane %v1161_v1, %v1210_v10  ;;  %v2131_v23 = vld [vmem:[%s3065_s16] ss:$0 sm:$0xff]  ;;  %v2406_v1 = vld [vmem:[%s2638_s3 + $0x38] sm:$0xff]  }
 0x131   : > { %2276 = vmatpush3.bf16.msra.mxu1 %v2396_v60  ;;  %v2399_v3 = vld [vmem:[%s2638_s3] sm:$0xff]  }
 0x132   : > { %2266 = vmatpush3.bf16.msra.mxu0 %v2385_v47  ;;  %2277 = vmatprep.subr.bf16.mxu1 %v2487_v45 }
 0x133   : > { %2267 = vmatprep.subr.bf16.mxu0 %v2487_v45 }
 0x135   : > { %2278 = vmatpush3.bf16.msra.mxu1 %v2397_v61 }
 0x136   : > { %2268 = vmatpush3.bf16.msra.mxu0 %v2386_v48  ;;  %2279 = vmatprep.subr.bf16.mxu1 %v2487_v45 }
 0x137   : > { %2285 = vmatprep.subr.bf16.mxu0 %v2487_v45 }
 0x139   : > { %2270 = vmatmul.mubr.msk.bf16.vlgmr.msra.gmra.mrb[0].mxu0 %vm1045_vm7, %v1012_v50  ;;  %2280 = vmatpush3.bf16.msra.mxu1 %v2398_v62 }
 0x13a   : > { %2301 = vmatprep.mubr.msk.bf16.mxu0 %vm2488_vm6, %v2487_v45  ;;  %2286 = vmatpush3.bf16.msra.mxu0 %v2387_v51  ;;  %v2909_v51 = vsub.s32 0, %v2889_v6 }
 0x13b   : > { %2287 = vmatprep.subr.bf16.mxu0 %v2487_v45  ;;  %2305 = vmatprep.subr.bf16.mxu1 %v2487_v45 }
 0x13c   : > { %2282 = vmatmul.mubr.msk.bf16.vlgmr.msra.gmra.mrb[0].mxu1 %vm1045_vm7, %v1012_v50 }
 0x13d   : > { %2306 = vmatpush3.bf16.msra.mxu1 %v1365_v0  ;;  %2307 = vmatprep.mubr.msk.bf16.mxu1 %vm2488_vm6, %v2487_v45 }
 0x13e   : > { %2288 = vmatpush3.bf16.msra.mxu0 %v2388_v52  ;;  %2311 = vmatprep.subr.bf16.mxu1 %v2487_v45 }
 0x13f   : > { %2289 = vmatprep.subr.bf16.mxu0 %v2487_v45 }
 0x142   : > { %2290 = vmatpush3.bf16.msra.mxu0 %v2389_v53 }
 0x143   : > { %2291 = vmatprep.subr.bf16.mxu0 %v2487_v45 }
 0x146   : > { %2292 = vmatpush3.bf16.msra.mxu0 %v2390_v54 }
 0x147   : > { %2293 = vmatprep.subr.bf16.mxu0 %v2487_v45 }
 0x14a   : > { %2294 = vmatpush3.bf16.msra.mxu0 %v2391_v55 }
 0x14b   : > { %2295 = vmatprep.subr.bf16.mxu0 %v2487_v45 }
 0x14e   : > { %2296 = vmatpush3.bf16.msra.mxu0 %v2392_v56 }
 0x14f   : > { %2297 = vmatprep.subr.bf16.mxu0 %v2487_v45 }
 0x152   : > { %2298 = vmatpush3.bf16.msra.mxu0 %v2393_v57 }
 0x153   : > { %2299 = vmatprep.subr.bf16.mxu0 %v2487_v45 }
 0x156   : > { %2300 = vmatpush3.bf16.msra.mxu0 %v2394_v58 }
 0x20c   : > { %v1083_v8 = vpop.f32.mrb[0].mxu0 }
 0x20d   : > { %v1169_v11 = vrot.slane %v1083_v8, %v1168_v7  ;;  %v2271_v12 = vpop.f32.mrb[1].mxu0  ;;  %v2403_v8 = vld [vmem:[%s2638_s3 + $0x20] sm:$0xff]  }
 0x20e   : > { %v1086_v13 = vpop.f32.mrb[2].mxu0 }
 0x20f   : > { %v1170_v14 = vcombine.high %v1169_v11, %v1169_v11  ;;  %v1177_v15 = vrot.slane %v1169_v11, %v1168_v7  ;;  %v2272_v16 = vpop.f32.mrb[3].mxu0  ;;  %v2917_v62 = vpop.f32.mrb[0].mxu1  ;;  %v2140_v11 = vld [vmem:[%s623_s22] ss:$0 sm:$0xff] }
 0x210   : > { %v2283_v63 = vpop.f32.mrb[1].mxu1 }
 0x211   : > { %v1184_v19 = vrot.slane %v1170_v14, %v1168_v7  ;;  %v1185_v20 = vrot.slane %v1177_v15, 7  ;;  %v1158_v0 = vpop.f32.mrb[2].mxu1 }
 0x212   : > { %v2284_v2 = vpop.f32.mrb[3].mxu1 }
 0x213   : > { %v1186_v21 = vrot.slane %v1184_v19, 7  ;;  %v1190_v22 = vsel %vm1189_vm9, 0.0, %v1185_v20 }
 0x214   : > { %v1204_v24 = vmul.f32 %v1203_v17, %v1190_v22  ;;  %v1212_v25 = vmul.f32 %v1211_v18, %v1190_v22 }
 0x215   : > { %v1191_v26 = vsel %vm1189_vm9, 0.0, %v1186_v21 }
 0x216   : > { %v1205_v27 = vmul.f32 %v1203_v17, %v1191_v26  ;;  %v1206_v28 = vadd.f32 %v2131_v23, %v1204_v24  ;;  %v1213_v29 = vmul.f32 %v1211_v18, %v1191_v26  ;;  %v1216_v30 = vrot.slane %v1212_v25, 1 }
 0x218   : > { %v1207_v31 = vadd.f32 %v2131_v23, %v1205_v27  ;;  %v1217_v32 = vrot.slane %v1213_v29, 1  ;;  %v1220_v33 = vadd.f32 %v1216_v30, %v1206_v28 }
 0x21a   : > { %v1221_v34 = vadd.f32 %v1217_v32, %v1207_v31  ;;  %v1222_v35 = vsub.f32 0.0, %v1220_v33 }
 0x21c   : > { %v1223_v36 = vsub.f32 0.0, %v1221_v34  ;;  %v1224_v37 = vmul.f32 1.442695, %v1222_v35 }
 0x21e   : > { %2407 = vpow2.f32 %v1224_v37  ;;  %v1226_v38 = vmul.f32 1.442695, %v1223_v36 }
 0x220   : > { %2409 = vpow2.f32 %v1226_v38 }
 0x228   : > { %v2408_v39 = vpop.eup %2407 }
 0x229   : > { %v1228_v40 = vadd.f32 1.0, %v2408_v39 }
 0x22a   : > { %v2410_v41 = vpop.eup %2409 }
 0x22b   : > { %v1229_v42 = vadd.f32 1.0, %v2410_v41  ;;  %2411 = vrcp.f32 %v1228_v40 }
 0x22d   : > { %2413 = vrcp.f32 %v1229_v42  ;;  %v1422_v42 = vld [vmem:[%s2629_s17] sm:$0xff] }
 0x235   : > { %v2412_v43 = vpop.eup %2411 }
 0x236   : > { %v1232_v46 = vmul.f32 %v2412_v43, %v1220_v33 }
 0x237   : > { %v2414_v44 = vpop.eup %2413 }
 0x238   : > { %v1233_v47 = vmul.f32 %v2414_v44, %v1221_v34  ;;  %v1423_v44 = vld [vmem:[%s2629_s17 + $0x8] sm:$0xff] }
 0x23a   : > { %v1236_v48 = vcombine.low %v1232_v46, %v1233_v47 }
 0x23c   : > { %v2904_v49 = vrot.slane %v1236_v48, %v1168_v7  ;;  %v2402_v7 = vld [vmem:[%s2638_s3 + $0x18] sm:$0xff]  }
 0x23e   : > { %v1245_v50 = vpack.c.bf16 %v2904_v49, %v2904_v49 }
 0x240   : > { %2302 = vmatmul.mubr.bf16.vlgmr.msra.gmra.mrb[4].mxu0 %v1245_v50 }
 0x313   : > { %v1344_v52 = vpop.f32.mrb[4].mxu0 }
 0x314   : > { %v1350_v53 = vpack.c.bf16 %v1344_v52, %v1344_v52  ;;  %v2303_v54 = vpop.f32.mrb[5].mxu0  ;;  %v1521_v55 = vrot.slane %v1344_v52, %v1202_v9  ;;  %v1497_v56 = vrot.slane %v1344_v52, %v2909_v51  ;;  %v1509_v60 = vrot.slane %v1344_v52, %v1508_v59  ;;  %v2404_v9 = vld [vmem:[%s2638_s3 + $0x28] sm:$0xff]  }
 0x315   : > { %v1347_v57 = vpop.f32.mrb[6].mxu0  ;;  %v1533_v61 = vrot.slane %v1344_v52, %v1210_v10  ;;  %v2405_v10 = vld [vmem:[%s2638_s3 + $0x30] sm:$0xff]   ;;  %s3066_s3 = scalar_lea.vmem %s3041_s11, %s2586_s20 }
 0x316   : > { %1524 = vbcast.lane.b32.xlu1 %v1521_v55, 260  ;;  %1500 = vbcast.lane.b32.xlu0 %v1497_v56, 260  ;;  %v2304_v58 = vpop.f32.mrb[7].mxu0 }
 0x317   : > { %2308 = vmatmul.mubr.msk.bf16.vlgmr.msra.gmra.mrb[4].mxu1 %vm1359_vm10, %v1350_v53 }
 0x318   : > { %2327 = vmatprep.mubr.msk.bf16.mxu1 %vm2488_vm6, %v2487_v45  ;;  %2312 = vmatpush3.bf16.msra.mxu1 %v2399_v3 }
 0x319   : > { %2313 = vmatprep.subr.bf16.mxu1 %v2487_v45 }
 0x31a   : > { %1528 = vbcast.lane.b32.xlu1 %v1521_v55, 268  ;;  %1504 = vbcast.lane.b32.xlu0 %v1497_v56, 268 }
 0x31c   : > { %2314 = vmatpush3.bf16.msra.mxu1 %v2400_v4 }
 0x31d   : > { %2315 = vmatprep.subr.bf16.mxu1 %v2487_v45 }
 0x31e   : > { %1516 = vbcast.lane.b32.xlu1 %v1509_v60, 268  ;;  %1512 = vbcast.lane.b32.xlu0 %v1509_v60, 260 }
 0x320   : > { %2316 = vmatpush3.bf16.msra.mxu1 %v2401_v5 }
 0x321   : > { %2317 = vmatprep.subr.bf16.mxu1 %v2487_v45 }
 0x322   : > { %1540 = vbcast.lane.b32.xlu1 %v1533_v61, 268  ;;  %1536 = vbcast.lane.b32.xlu0 %v1533_v61, 260 }
 0x324   : > { %2318 = vmatpush3.bf16.msra.mxu1 %v2402_v7 }
 0x325   : > { %2319 = vmatprep.subr.bf16.mxu1 %v2487_v45 }
 0x326   : > { %1601 = vbcast.lane.b32.xlu1 %v1497_v56, 284  ;;  %1597 = vbcast.lane.b32.xlu0 %v1497_v56, 276 }
 0x328   : > { %2320 = vmatpush3.bf16.msra.mxu1 %v2403_v8 }
 0x329   : > { %2321 = vmatprep.subr.bf16.mxu1 %v2487_v45 }
 0x32a   : > { %1609 = vbcast.lane.b32.xlu1 %v1509_v60, 284  ;;  %1605 = vbcast.lane.b32.xlu0 %v1509_v60, 276 }
 0x32c   : > { %2322 = vmatpush3.bf16.msra.mxu1 %v2404_v9 }
 0x32d   : > { %2323 = vmatprep.subr.bf16.mxu1 %v2487_v45 }
 0x32e   : > { %1617 = vbcast.lane.b32.xlu1 %v1521_v55, 284  ;;  %1613 = vbcast.lane.b32.xlu0 %v1521_v55, 276 }
 0x330   : > { %2324 = vmatpush3.bf16.msra.mxu1 %v2405_v10 }
 0x331   : > { %2325 = vmatprep.subr.bf16.mxu1 %v2487_v45  ;;  %v2490_v45 = vmov 1966171168  }
 0x332   : > { %1625 = vbcast.lane.b32.xlu1 %v1533_v61, 284  ;;  %1621 = vbcast.lane.b32.xlu0 %v1533_v61, 276  ;;  %v1427_v23 = vunpack.c.l.s4 %v2490_v45 }
 0x334   : > { %2326 = vmatpush3.bf16.msra.mxu1 %v2406_v1  ;;  %v1428_v28 = vunpack.c.0.s8 %v1427_v23  ;;  %v1692_v1 = vsub.f32 0.0, %v2917_v62 }
 0x336   : > { %v1431_v33 = vsub.s32 %v1428_v28, %v2889_v6 }
 0x388   : > { %v2939_v24 = vpop.permute.xlu0 %1500  ;;  %v2941_v26 = vpop.permute.xlu1 %1524 }
 0x38c   : > { %v2944_v34 = vpop.permute.xlu0 %1504  ;;  %v2946_v36 = vpop.permute.xlu1 %1528 }
 0x390   : > { %v2948_v41 = vpop.permute.xlu0 %1512  ;;  %v2951_v43 = vpop.permute.xlu1 %1516 }
 0x394   : > { %v2959_v60 = vpop.permute.xlu0 %1536  ;;  %v2961_v3 = vpop.permute.xlu1 %1540 }
 0x3ea   : > { %v1401_v12 = vpop.f32.mrb[4].mxu1 }
 0x3eb   : > { %v1402_v13 = vadd.f32 %v2140_v11, %v1401_v12  ;;  %v2309_v14 = vpop.f32.mrb[5].mxu1 }
 0x3ec   : > { %v1404_v15 = vpop.f32.mrb[6].mxu1 }
 0x3ed   : > { %v1408_v16 = vand.u32 2147483647, %v1402_v13  ;;  %v2310_v17 = vpop.f32.mrb[7].mxu1  ;;  %v1407_v32 = vmax.f32 %v1402_v13, 0.0  ;;  %v1598_v13 = vpop.permute.xlu0 %1597 }
 0x3ee   : > { %v1602_v15 = vpop.permute.xlu1 %1601  ;;  %v1693_v17 = vmul.f32 1.442695, %v1692_v1 }
 0x3ef   : > { %v1409_v18 = vsub.f32 0.0, %v1408_v16 }
 0x3f1   : > { %v1410_v19 = vmul.f32 1.442695, %v1409_v18 }
 0x3f3   : > { %2415 = vpow2.f32 %v1410_v19 }
 0x3fd   : > { %v2416_v20 = vpop.eup %2415 }
 0x3fe   : > { %v1412_v21 = vadd.f32 1.0, %v2416_v20  ;;  %v1415_v22 = vmul.f32 -0.5, %v2416_v20  ;;  %v1418_v27 = vand.u32 2147483647, %v2416_v20 }
 0x400   : > { %2417 = vlog2.f32 %v1412_v21  ;;  %v1416_v25 = vadd.f32 1.0, %v1415_v22  ;;  %vm1419_vm11 = vcmp.lt.f32.partialorder %v1418_v27, 0.0004427343  ;;  %v1606_v22 = vpop.permute.xlu0 %1605  ;;  %v1610_v27 = vpop.permute.xlu1 %1609 }
 0x402   : > { %v1417_v31 = vmul.f32 %v2416_v20, %v1416_v25 }
 0x40a   : > { %v2418_v29 = vpop.eup %2417 }
 0x40b   : > { %v1414_v30 = vmul.f32 0.6931472, %v2418_v29 }
 0x40d   : > { %v1420_v35 = vsel %vm1419_vm11, %v1417_v31, %v1414_v30 }
 0x40e   : > { %v1421_v37 = vadd.f32 %v1420_v35, %v1407_v32 }
 0x410   : > { %v1432_v38 = vrot.slane %v1421_v37, %v1431_v33  ;;  %v1424_v6 = vmul.f32 %v1421_v37, %v2904_v49 }
 0x412   : > { %v1433_v39 = vcombine.high %v1432_v38, %v1432_v38  ;;  %v1440_v40 = vrot.slane %v1432_v38, %v1431_v33  ;;  %v1549_v2 = vrot.slane %v1424_v6, %v1431_v33 }
 0x414   : > { %v1447_v46 = vrot.slane %v1433_v39, %v1431_v33  ;;  %v1448_v47 = vcombine.high %v1440_v40, %v1440_v40  ;;  %v1453_v48 = vrot.slane %v1440_v40, %v2909_v51  ;;  %v1550_v11 = vcombine.high %v1549_v2, %v1549_v2 }
 0x415   : > { %v1557_v12 = vrot.slane %v1549_v2, %v1431_v33 }
 0x416   : > { %v1449_v50 = vcombine.high %v1447_v46, %v1447_v46  ;;  %v1457_v52 = vrot.slane %v1447_v46, %v2909_v51  ;;  %v1461_v53 = vrot.slane %v1448_v47, %v2909_v51  ;;  %v1470_v54 = vmul.f32 %v1453_v48, %v1422_v42 }
 0x417   : > { %v1471_v55 = vmul.f32 %v1453_v48, %v1423_v44  ;;  %v1564_v18 = vrot.slane %v1550_v11, %v1431_v33  ;;  %v1565_v19 = vcombine.high %v1557_v12, %v1557_v12  ;;  %v1570_v20 = vrot.slane %v1557_v12, %v2909_v51 }
 0x418   : > { %v1465_v56 = vrot.slane %v1449_v50, %v2909_v51  ;;  %v1472_v57 = vmul.f32 %v1457_v52, %v1422_v42  ;;  %v1473_v58 = vmul.f32 %v1457_v52, %v1423_v44  ;;  %v1474_v59 = vmul.f32 %v1461_v53, %v1422_v42  ;;  %v1614_v50 = vpop.permute.xlu0 %1613 }
 0x419   : > { %v1475_v61 = vmul.f32 %v1461_v53, %v1423_v44  ;;  %v1478_v63 = vmul.f32 1.442695, %v1470_v54  ;;  %v1480_v0 = vmul.f32 1.442695, %v1471_v55  ;;  %v1566_v45 = vcombine.high %v1564_v18, %v1564_v18  ;;  %v1618_v55 = vpop.permute.xlu1 %1617 }
 0x41a   : > { %v1482_v4 = vmul.f32 1.442695, %v1472_v57  ;;  %v1484_v5 = vmul.f32 1.442695, %v1473_v58  ;;  %v1476_v7 = vmul.f32 %v1465_v56, %v1422_v42  ;;  %v1486_v8 = vmul.f32 1.442695, %v1474_v59 }
 0x41b   : > { %2419 = vpow2.f32 %v1478_v63  ;;  %v1477_v9 = vmul.f32 %v1465_v56, %v1423_v44  ;;  %v1488_v10 = vmul.f32 1.442695, %v1475_v61  ;;  %v1574_v23 = vrot.slane %v1564_v18, %v2909_v51 }
 0x41c   : > { %2421 = vpow2.f32 %v1480_v0  ;;  %v1490_v14 = vmul.f32 1.442695, %v1476_v7  ;;  %v1578_v28 = vrot.slane %v1565_v19, %v2909_v51  ;;  %v1587_v29 = vmul.f32 %v1570_v20, %v2939_v24 }
 0x41d   : > { %2423 = vpow2.f32 %v1482_v4  ;;  %v1492_v16 = vmul.f32 1.442695, %v1477_v9  ;;  %v1588_v32 = vmul.f32 %v1570_v20, %v2944_v34  ;;  %v1582_v39 = vrot.slane %v1566_v45, %v2909_v51 }
 0x41e   : > { %2425 = vpow2.f32 %v1484_v5  ;;  %v1589_v40 = vmul.f32 %v1574_v23, %v2948_v41  ;;  %v1590_v42 = vmul.f32 %v1574_v23, %v2951_v43  ;;  %v1591_v47 = vmul.f32 %v1578_v28, %v2941_v26 }
 0x41f   : > { %2427 = vpow2.f32 %v1486_v8  ;;  %v1592_v34 = vmul.f32 %v1578_v28, %v2946_v36  ;;  %v1593_v41 = vmul.f32 %v1582_v39, %v2959_v60  ;;  %v1594_v26 = vmul.f32 %v1582_v39, %v2961_v3 }
 0x420   : > { %2429 = vpow2.f32 %v1488_v10  ;;  %v1622_v10 = vpop.permute.xlu0 %1621 }
 0x421   : > { %2431 = vpow2.f32 %v1490_v14 }
 0x422   : > { %2433 = vpow2.f32 %v1492_v16 }
 0x423   : > { %2435 = vpow2.f32 %v1693_v17 }
 0x425   : > { %v2420_v21 = vpop.eup %2419 }
 0x426   : > { %v2422_v25 = vpop.eup %2421  ;;  %v1627_v30 = vmul.f32 0.0, %v2420_v21 }
 0x427   : > { %v2424_v31 = vpop.eup %2423  ;;  %v1628_v33 = vmul.f32 0.0, %v2422_v25 }
 0x428   : > { %v2426_v35 = vpop.eup %2425  ;;  %v1629_v37 = vadd.f32 %v1627_v30, %v1587_v29 }
 0x429   : > { %v2428_v38 = vpop.eup %2427  ;;  %v1630_v44 = vadd.f32 %v1628_v33, %v1588_v32 }
 0x42a   : > { %v2430_v46 = vpop.eup %2429  ;;  %v1631_v48 = vmul.f32 %v1629_v37, %v1598_v13  ;;  %v1640_v24 = vmul.f32 %v2424_v31, %v1629_v37  ;;  %v1653_v6 = vmul.f32 0.0, %v2428_v38  ;;  %v1626_v13 = vpop.permute.xlu1 %1625 }
 0x42b   : > { %v1632_v52 = vmul.f32 %v1630_v44, %v1602_v15  ;;  %v1641_v53 = vmul.f32 %v2426_v35, %v1630_v44  ;;  %v1654_v54 = vmul.f32 0.0, %v2430_v46  ;;  %v2432_v57 = vpop.eup %2431  ;;  %v2142_v44 = vld [vmem:[%s3066_s3] ss:$0 sm:$0xff] }
 0x42c   : > { %v1642_v56 = vadd.f32 %v1640_v24, %v1589_v40  ;;  %v1655_v51 = vadd.f32 %v1653_v6, %v1591_v47  ;;  %v2434_v61 = vpop.eup %2433  ;;  %v1690_v24 = vmul.f32 %v2142_v44, %v2904_v49  ;;  %v2439_v49 = vld [vmem:[%s3067_s26] sm:$0xff] (!%p2151_p5)  }
 0x42d   : > { %v1633_v43 = vadd.f32 %v1632_v52, %v1631_v48  ;;  %v1643_v58 = vadd.f32 %v1641_v53, %v1590_v42  ;;  %v1656_v59 = vadd.f32 %v1654_v54, %v1592_v34  ;;  %v2436_v4 = vpop.eup %2435 }
 0x42e   : > { %v1644_v63 = vmul.f32 %v1642_v56, %v1606_v22  ;;  %v1657_v0 = vmul.f32 %v1655_v51, %v1614_v50  ;;  %v1666_v2 = vmul.f32 %v2432_v57, %v1655_v51  ;;  %v1695_v14 = vadd.f32 1.0, %v2436_v4 }
 0x42f   : > { %v1634_v36 = vrot.slane %v1633_v43, 4  ;;  %v1645_v5 = vmul.f32 %v1643_v58, %v1610_v27  ;;  %v1658_v7 = vmul.f32 %v1656_v59, %v1618_v55  ;;  %v1667_v8 = vmul.f32 %v2434_v61, %v1656_v59  ;;  %v2441_v59 = vld [vmem:[%s3067_s26 + $0x10] sm:$0xff] (!%p2151_p5)  }
 0x430   : > { %v1668_v9 = vadd.f32 %v1666_v2, %v1593_v41  ;;  %2437 = vrcp.f32 %v1695_v14  ;;  %v2491_v57 = vmov (!%p2151_p5), 0.0   ;;  %v2442_v2 = vld [vmem:[%s3067_s26 + $0x18] sm:$0xff] (!%p2151_p5)  }
 0x431   : > { %v1635_v1 = vadd.f32 %v1634_v36, %v1633_v43  ;;  %v1646_v11 = vadd.f32 %v1645_v5, %v1644_v63  ;;  %v1659_v12 = vadd.f32 %v1658_v7, %v1657_v0  ;;  %v1669_v60 = vadd.f32 %v1667_v8, %v1594_v26  ;;  %2331 = vmatprep.subr.bf16.mxu0 (!%p2151_p5), %v2491_v57 }
 0x432   : > { %v1670_v15 = vmul.f32 %v1668_v9, %v1622_v10  ;;  %2332 = vmatpush3.bf16.msra.mxu0 (!%p2151_p5), %v2439_v49  ;;  %2339 = vmatprep.mubr.msk.bf16.mxu0 (!%p2151_p5), %vm2492_vm14, %v2491_v57 }
 0x433   : > { %v1647_v16 = vrot.slane %v1646_v11, 4  ;;  %v1671_v17 = vmul.f32 %v1669_v60, %v1626_v13  ;;  %v1636_v3 = vrot.slane %v1635_v1, 2  ;;  %v1660_v18 = vrot.slane %v1659_v12, 4  ;;  %2333 = vmatprep.subr.bf16.mxu0 (!%p2151_p5), %v2491_v57 }
 0x435   : > { %v1637_v19 = vadd.f32 %v1636_v3, %v1635_v1  ;;  %v1648_v20 = vadd.f32 %v1647_v16, %v1646_v11  ;;  %v1661_v21 = vadd.f32 %v1660_v18, %v1659_v12  ;;  %v1672_v22 = vadd.f32 %v1671_v17, %v1670_v15  ;;  %v2153_v18 = vld [vmem:[%s3068_s30] ss:$0 sm:$0xff] (!%p2151_p5) }
 0x437   : > { %v1649_v45 = vrot.slane %v1648_v20, 2  ;;  %v1662_v23 = vrot.slane %v1661_v21, 2  ;;  %v1673_v25 = vrot.slane %v1672_v22, 4  ;;  %v1638_v27 = vrot.slane %v1637_v19, 1 }
 0x439   : > { %v1650_v28 = vadd.f32 %v1649_v45, %v1648_v20  ;;  %v1663_v29 = vadd.f32 %v1662_v23, %v1661_v21  ;;  %v1674_v30 = vadd.f32 %v1673_v25, %v1672_v22  ;;  %v1639_v35 = vadd.f32 %v1638_v27, %v1637_v19 }
 0x43a   : > { %v2438_v47 = vpop.eup %2437 }
 0x43b   : > { %v1651_v31 = vrot.slane %v1650_v28, 1  ;;  %v1664_v32 = vrot.slane %v1663_v29, 1  ;;  %v1675_v33 = vrot.slane %v1674_v30, 2  ;;  %v1697_v50 = vmul.f32 %v2438_v47, %v2917_v62  ;;  %v2440_v62 = vld [vmem:[%s3067_s26 + $0x8] sm:$0xff] (!%p2151_p5)  }
 0x43c   : > { %2334 = vmatpush3.bf16.msra.mxu0 (!%p2151_p5), %v2440_v62 }
 0x43d   : > { %v1652_v37 = vadd.f32 %v1651_v31, %v1650_v28  ;;  %v1676_v38 = vadd.f32 %v1675_v33, %v1674_v30  ;;  %v1665_v39 = vadd.f32 %v1664_v32, %v1663_v29  ;;  %2335 = vmatprep.subr.bf16.mxu0 (!%p2151_p5), %v2491_v57 }
 0x43f   : > { %v1677_v40 = vrot.slane %v1676_v38, 1  ;;  %v1679_v42 = vsel %vm1189_vm9, %v1639_v35, %v1652_v37 }
 0x440   : > { %v1680_v46 = vsel %vm1363_vm8, %v1679_v42, %v1665_v39  ;;  %2336 = vmatpush3.bf16.msra.mxu0 (!%p2151_p5), %v2441_v59 }
 0x441   : > { %v1678_v48 = vadd.f32 %v1677_v40, %v1676_v38  ;;  %2337 = vmatprep.subr.bf16.mxu0 (!%p2151_p5), %v2491_v57 }
 0x443   : > { %v1682_v6 = vsel %vm1681_vm12, %v1680_v46, %v1678_v48 }
 0x444   : > { %v1691_v34 = vadd.f32 %v1690_v24, %v1682_v6  ;;  %2338 = vmatpush3.bf16.msra.mxu0 (!%p2151_p5), %v2442_v2 }
 0x446   : > { %v1698_v52 = vmul.f32 %v1697_v50, %v1691_v34 }
 0x448   : > { %v1699_v53 = vpack.c.bf16 %v1698_v52, %v1698_v52 }
 0x44a   : > { %2328 = vmatmul.mubr.bf16.vlgmr.msra.gmra.mrb[8].mxu1 %v1699_v53 }
 0x51a   : > { %1809 = sbr.rel (%p2151_p5) target bundleno = 1871 (0x74f), region = 88 }
 0x51d   : > { %v1798_v54 = vpop.f32.mrb[8].mxu1 }
 0x51e   : > { %1805 = vst.msk [vmem:[#allocation2] sm:$0xf] %vm1804_vm13, %v1798_v54  ;;  %v2329_v55 = vpop.f32.mrb[9].mxu1 }
 0x51f   : > { %v1801_v56 = vpop.f32.mrb[10].mxu1 }
 0x520   : > { %v2330_v51 = vpop.f32.mrb[11].mxu1 }
 0x525   : > { %v2152_v41 = vld.sshfl [vmem:[#allocation2] sm:$0x33 pattern:$0x76325410] }
 0x526   : > { %v1819_v43 = vcombine.high %v2152_v41, %v2152_v41  ;;  %v1823_v58 = vsel %vm1822_vm15, %v2152_v41, 0.0 }
 0x527   : > { %v1824_v61 = vrot.slane %v1823_v58, 4 }
 0x528   : > { %v1830_v26 = vsel %vm1822_vm15, %v1819_v43, 0.0 }
 0x529   : > { %v1825_v63 = vadd.f32 %v1824_v61, %v1823_v58  ;;  %v1831_v0 = vrot.slane %v1830_v26, 4 }
 0x52b   : > { %v1826_v4 = vrot.slane %v1825_v63, 2  ;;  %v1832_v36 = vadd.f32 %v1831_v0, %v1830_v26 }
 0x52d   : > { %v1827_v5 = vadd.f32 %v1826_v4, %v1825_v63  ;;  %v1833_v7 = vrot.slane %v1832_v36, 2 }
 0x52f   : > { %v1828_v8 = vrot.slane %v1827_v5, 1  ;;  %v1834_v9 = vadd.f32 %v1833_v7, %v1832_v36 }
 0x531   : > { %v1829_v10 = vadd.f32 %v1828_v8, %v1827_v5  ;;  %v1835_v1 = vrot.slane %v1834_v9, 1 }
 0x533   : > { %v1836_v11 = vadd.f32 %v1835_v1, %v1834_v9  ;;  %v1838_v12 = vmul.f32 0.5, %v1829_v10 }
 0x535   : > { %v1839_v60 = vmul.f32 0.5, %v1836_v11  ;;  %v1840_v13 = vpack.c.bf16 %v1838_v12, %v1838_v12 }
 0x537   : > { %v1841_v14 = vpack.c.bf16 %v1839_v60, %v1839_v60  ;;  %v1859_v15 = vunpack.c.l.b16 %v1840_v13 }
 0x539   : > { %v1860_v16 = vunpack.c.l.b16 %v1841_v14 }
 0x53b   : > { %v1862_v17 = vsel %vm1861_vm0, %v1860_v16, %v1859_v15 }
 0x53c   : > { %v1863_v3 = vpack.c.b16 %v1862_v17, %v1862_v17 }
 0x53e   : > { %2340 = vmatmul.mubr.msk.bf16.vlgmr.msra.gmra.mrb[0].mxu0 %vm1045_vm7, %v1863_v3 }
 0x611   : > { %v1925_v19 = vpop.f32.mrb[0].mxu0 }
 0x612   : > { %v1926_v20 = vadd.f32 %v2153_v18, %v1925_v19  ;;  %v2341_v21 = vpop.f32.mrb[1].mxu0 }
 0x613   : > { %v1928_v22 = vpop.f32.mrb[2].mxu0 }
 0x614   : > { %v2342_v45 = vpop.f32.mrb[3].mxu0  ;;  %v1931_v23 = vsel %vm1363_vm8, %v1926_v20, -inf }
 0x615   : > { %1932 = vmax.xlane.f32.xlu0 %v1931_v23 }
 0x6a2   : > { %v1933_v25 = vpop.xlane.xlu0 %1932 }
 0x6a3   : > { %v1934_v27 = vsub.f32 %v1926_v20, %v1933_v25 }
 0x6a5   : > { %v1935_v28 = vmul.f32 1.442695, %v1934_v27 }
 0x6a7   : > { %2443 = vpow2.f32 %v1935_v28 }
 0x6b1   : > { %v2444_v29 = vpop.eup %2443 }
 0x6b2   : > { %v1937_v30 = vsel %vm1363_vm8, %v2444_v29, 0.0 }
 0x6b3   : > { %1938 = vadd.xlane.f32.xlu0 %v1937_v30 }
 0x740   : > { %v1939_v31 = vpop.xlane.xlu0 %1938 }
 0x741   : > { %2445 = vrcp.f32 %v1939_v31 }
 0x74b   : > { %v2446_v32 = vpop.eup %2445 }
 0x74c   : > { %v1941_v33 = vmul.f32 %v2446_v32, %v2444_v29 }
 0x74e   : > { %1942 = vst [vmem:[#allocation3] sm:$0x3] %v1941_v33 }
 0x74f PF: > { %p2348_p6 = scmp.eq.s32.totalorder %s2580_s19, 3  ;;  %s2493_s18 = smov [#allocation3]  }
 0x750   : > { %s1950_s25 = sshll.u32 %s2493_s18, 4  ;;  %s1951_s25 = int_to_ptr.vmem [resolvable:$true] %s1950_s25 }
 0x751   : > { %s2447_s28 = scalar_lea.vmem %s1951_s25, 32  ;;  %p2454_p10 = scmp.lt.s32.totalorder %s1951_s25, %s1951_s25 }
 0x752   : > { %p2448_p7 = scmp.ne.s32.totalorder %s1951_s25, %s2447_s28  ;;  %p2455_p11 = scmp.lt.s32.totalorder %s2447_s28, %s2447_s28 }
 0x754   : > { %p2449_p8 = pnand %p2448_p7, %p2348_p6  ;;  %p2456_p12 = por %p2455_p11, %p2454_p10 }
 0x756   : > { %p2450_p9 = pneg %p2449_p8 }
 0x758   : > { %p2457_p13 = pnand %p2456_p12, %p2450_p9 }
 0x75a   : > { %2460 = shalt.err (!%p2457_p13)
}
 0x75b   : > { %s3069_s21 = sld [smem:[#allocation14_spill]] }
 0x761   : > { %s2461_s22 = scalar_lea.hbm %s3069_s21, 32 }
 0x762   : > { %p2462_p0 = scmp.ne.s32.totalorder %s3069_s21, %s2461_s22  ;;  %p2467_p3 = scmp.lt.u32.totalorder %s2461_s22, %s3069_s21 }
 0x764   : > { %p2463_p1 = pnand %p2462_p0, %p2348_p6 }
 0x766   : > { %p2464_p2 = pneg %p2463_p1 }
 0x768   : > { %p2469_p4 = pnand %p2467_p3, %p2464_p2 }
 0x76a   : > { %2472 = shalt.err (!%p2469_p4)
}
 0x76b   : > { %2345 = dma.vmem_to_hbm [thread:$0]  (%p2348_p6), %s1951_s25, 32, %s3069_s21, [#allocation4]  }
 0x76c   : > { %2478 = dma.done.wait (%p2348_p6), [#allocation4], 32  }
 0x76d   : > { %2480 = vsyncadd (%p2348_p6), [#allocation4], 4294967264 }
 0x76e PF: > { %s3070_s0 = sld [smem:[#allocation6_spill]] }
 0x774   : > { %s26_s18 = sadd.s32 1, %s3070_s0  }
 0x775   : > { %p23_p5 = scmp.ge.s32.totalorder %s26_s18, 6  }
 0x777   :  { %25 = sbr.rel (!%p23_p5) target bundleno = 10 (0xa), region = 142 }
 0x77e   :  { %1963 = vsyncpa [#allocation4], 1 }
 0x77f   :  { %1965 = vsyncpa [#allocation4 + $0x1], 1 }

</bundles_post_ra>
